<compile_context>
chip_gen: v7x
topology: tpu7x:2x2x1
jax: 0.10.0
libtpu: 0.0.40
codegen_flags: <defaults>
</compile_context>

<pallas_src>
import functools
import math

import jax
import jax.numpy as jnp
import numpy as np
from jax.experimental import pallas as pl
from jax.experimental.pallas import tpu as pltpu


def _round_up(v, m):
    return (v + m - 1) // m * m


# ---------------------------------------------------------------------------
# Fused kernel: fc0 (step 0) -> GCN layer l (every step) -> fc1 (last step)
# ---------------------------------------------------------------------------
def _fused_gcnii_kernel(x_ref, adj_ref, fc0_w_ref, fc0_b_ref, convw_ref,
                        fc1_w_ref, fc1_b_ref, out_ref, h_ref, h0_ref, *, alpha):
    l = pl.program_id(0)

    # --- input projection (bf16 MXU, f32 accumulate), first grid step only ---
    @pl.when(l == 0)
    def _():
        h = jnp.dot(x_ref[...], fc0_w_ref[...], preferred_element_type=jnp.float32)
        h = jnp.maximum(h + fc0_b_ref[...], 0.0)
        h_ref[...] = h.astype(jnp.bfloat16)
        h0_ref[...] = (alpha * h).astype(jnp.bfloat16)   # alpha folded into h0

    # --- GCNII layer l: adj pre-scaled by (1-alpha); theta folded into W' ---
    h = h_ref[...]                                                       # bf16
    hi = jnp.dot(adj_ref[...], h, preferred_element_type=jnp.float32)    # (1-a)*adj @ h
    support = (hi + h0_ref[...].astype(jnp.float32)).astype(jnp.bfloat16)
    out = jnp.dot(support, convw_ref[...], preferred_element_type=jnp.float32)
    h_new = jnp.maximum(out + h.astype(jnp.float32), 0.0)                # residual + relu
    h_new_bf16 = h_new.astype(jnp.bfloat16)
    h_ref[...] = h_new_bf16

    # --- output projection, last grid step only ---
    @pl.when(l == pl.num_programs(0) - 1)
    def _():
        out_ref[...] = (
            jnp.dot(h_new_bf16, fc1_w_ref[...], preferred_element_type=jnp.float32)
            + fc1_b_ref[...]
        )


# ---------------------------------------------------------------------------
# pallas_call builder (single- or default-buffered invariant operands)
# ---------------------------------------------------------------------------
def _build_gcnii_call(*, nlayers, n_pad, f_pad, h_pad, c_pad, alpha,
                      single_buffer_invariants, vmem_limit_bytes, cost_estimate):
    def resident(shape):
        kwargs = {}
        if single_buffer_invariants:
            # Constant block index -> no need for double buffering (saves VMEM,
            # critical at realistic N on v7x's 64 MiB).
            kwargs["pipeline_mode"] = pl.Buffered(1)
        nd = len(shape)
        return pl.BlockSpec(shape, lambda l, _nd=nd: (0,) * _nd, **kwargs)

    grid_spec = pltpu.PrefetchScalarGridSpec(
        num_scalar_prefetch=0,
        grid=(nlayers,),
        in_specs=[
            resident((n_pad, f_pad)),                                  # x (bf16)
            resident((n_pad, n_pad)),                                  # (1-alpha)*adj (bf16)
            resident((f_pad, h_pad)),                                  # fc0_w (bf16)
            resident((1, h_pad)),                                      # fc0_b (f32)
            # Per-layer W'_l streamed (default depth-2 buffering); leading dim squeezed.
            pl.BlockSpec((None, h_pad, h_pad), lambda l: (l, 0, 0)),
            resident((h_pad, c_pad)),                                  # fc1_w (bf16)
            resident((1, c_pad)),                                      # fc1_b (f32)
        ],
        out_specs=pl.BlockSpec((n_pad, c_pad), lambda l: (0, 0)),
        scratch_shapes=[
            pltpu.VMEM((n_pad, h_pad), jnp.bfloat16),   # h (carried across layers)
            pltpu.VMEM((n_pad, h_pad), jnp.bfloat16),   # alpha * h0
        ],
    )
    return pl.pallas_call(
        functools.partial(_fused_gcnii_kernel, alpha=alpha),
        out_shape=jax.ShapeDtypeStruct((n_pad, c_pad), jnp.float32),
        grid_spec=grid_spec,
        compiler_params=pltpu.CompilerParams(
            dimension_semantics=("arbitrary",),   # layer loop carries state via scratch
            vmem_limit_bytes=vmem_limit_bytes,
        ),
        cost_estimate=cost_estimate,
    )


# ---------------------------------------------------------------------------
# Wrapper: pad to lane-dense bf16 shapes, fold alpha/theta, one pallas_call
# ---------------------------------------------------------------------------
def gcnii_ppi_forward(x, adj, params, *, lamda, alpha):
    n, nfeat = x.shape
    nhidden = params["fc0_w"].shape[1]
    nclass = params["fc1_w"].shape[1]
    nlayers = len(params["conv_ws"])

    n_pad = _round_up(n, 16)         # bf16 sublane packing: (16, 128) tiles
    f_pad = _round_up(nfeat, 128)    # lane-dense feature dims (use 256-multiples of
    h_pad = _round_up(nhidden, 128)  # nhidden on v6e/v7x for full 256-wide MXU)
    c_pad = _round_up(nclass, 128)

    # Zero-pad; MXU operands in bf16, biases stay f32 (added after f32 accumulation).
    xp = jnp.pad(x, ((0, n_pad - n), (0, f_pad - nfeat))).astype(jnp.bfloat16)
    adjp = ((1.0 - alpha) *
            jnp.pad(adj, ((0, n_pad - n), (0, n_pad - n)))).astype(jnp.bfloat16)
    fc0_w = jnp.pad(params["fc0_w"], ((0, f_pad - nfeat), (0, h_pad - nhidden))).astype(jnp.bfloat16)
    fc0_b = jnp.pad(params["fc0_b"], ((0, 0), (0, h_pad - nhidden))).astype(jnp.float32)
    fc1_w = jnp.pad(params["fc1_w"], ((0, h_pad - nhidden), (0, c_pad - nclass))).astype(jnp.bfloat16)
    fc1_b = jnp.pad(params["fc1_b"], ((0, 0), (0, c_pad - nclass))).astype(jnp.float32)

    # Fold theta_l into the per-layer weight: W'_l = theta_l * W_l + (1 - theta_l) * I.
    eye = jnp.eye(h_pad, dtype=jnp.float32)
    folded = []
    for i, w in enumerate(params["conv_ws"]):
        theta = math.log(lamda / (i + 1) + 1.0)
        wp = jnp.pad(w, ((0, h_pad - nhidden), (0, h_pad - nhidden)))
        folded.append(theta * wp + (1.0 - theta) * eye)
    conv_w = jnp.stack(folded, axis=0).astype(jnp.bfloat16)   # [L, H_pad, H_pad]

    flops = (
        2 * n_pad * f_pad * h_pad
        + nlayers * (2 * n_pad * n_pad * h_pad + 2 * n_pad * h_pad * h_pad)
        + 2 * n_pad * h_pad * c_pad
    )
    bytes_accessed = (
        2 * (xp.size + adjp.size + fc0_w.size + conv_w.size + fc1_w.size)
        + 4 * (fc0_b.size + fc1_b.size + n_pad * c_pad)
    )
    cost = pl.CostEstimate(flops=int(flops), transcendentals=0,
                           bytes_accessed=int(bytes_accessed))

    # VMEM budget: single-buffered bf16 residents + double-buffered W' / output
    # + h/h0 scratch, with 2x headroom.  TODO(synk): cap at ~56 MiB when targeting v7x.
    resident_bytes = (
        2 * (xp.size + adjp.size + fc0_w.size + fc1_w.size)        # bf16 residents
        + 4 * (fc0_b.size + fc1_b.size)
        + 2 * (2 * h_pad * h_pad)                                  # W' double buffer (bf16)
        + 2 * (2 * n_pad * h_pad)                                  # h / h0 scratch (bf16)
        + 2 * (4 * n_pad * c_pad)                                  # output double buffer (f32)
    )
    vmem_limit = int(max(32 << 20, min(2 * resident_bytes + (4 << 20), 96 << 20)))

    common = dict(nlayers=nlayers, n_pad=n_pad, f_pad=f_pad, h_pad=h_pad, c_pad=c_pad,
                  alpha=float(alpha), vmem_limit_bytes=vmem_limit, cost_estimate=cost)
    args = (xp, adjp, fc0_w, fc0_b, conv_w, fc1_w, fc1_b)

    try:
        out_padded = _build_gcnii_call(single_buffer_invariants=True, **common)(*args)
        out_padded = jax.block_until_ready(out_padded)
    except Exception:
        # Fallback if this JAX build rejects pipeline_mode=pl.Buffered(1) on
        # pallas_call BlockSpecs: use Mosaic's default buffering (correct, more VMEM).
        out_padded = _build_gcnii_call(single_buffer_invariants=False, **common)(*args)

    return out_padded[:n, :nclass]


# ---------------------------------------------------------------------------
# Pure-numpy f32 reference (mirrors the PyTorch module, eval mode)
# ---------------------------------------------------------------------------
def _reference(x, adj, params, lamda, alpha):
    x = np.asarray(x, np.float32)
    adj = np.asarray(adj, np.float32)
    h = np.maximum(x @ np.asarray(params["fc0_w"]) + np.asarray(params["fc0_b"]), 0.0)
    h0 = h
    for i, w in enumerate(params["conv_ws"]):
        theta = math.log(lamda / (i + 1) + 1.0)
        hi = adj @ h
        support = (1.0 - alpha) * hi + alpha * h0
        out = theta * (support @ np.asarray(w)) + (1.0 - theta) * support + h
        h = np.maximum(out, 0.0)
    return h @ np.asarray(params["fc1_w"]) + np.asarray(params["fc1_b"])


def _bf16_rt(a):
    # Round-trip through bf16 so the f32 reference and the bf16-MXU kernel see
    # identical operand values; remaining differences come from the kernel's
    # internal bf16 intermediates (h/h0/support) and folded-constant rounding.
    return jnp.asarray(a, jnp.float32).astype(jnp.bfloat16).astype(jnp.float32)


if __name__ == "__main__":
    # Small, module-consistent shapes.
    N, nfeat, nhidden, nclass, nlayers = 32, 16, 32, 8, 3
    lamda, alpha = 0.5, 0.1

    key = jax.random.PRNGKey(0)
    k_x, k_adj, k_conv, k_w0, k_b0, k_w1, k_b1 = jax.random.split(key, 7)

    # Inputs
    x = jax.random.normal(k_x, (N, nfeat), jnp.float32)
    a = jax.random.uniform(k_adj, (N, N), jnp.float32)
    a = 0.5 * (a + a.T)
    adj = a / jnp.sum(a, axis=1, keepdims=True)  # row-normalized dense adjacency

    # Parameters (deterministic init mirroring the module's shapes)
    stdv_h = 1.0 / math.sqrt(nhidden)
    conv_keys = jax.random.split(k_conv, nlayers)
    conv_ws = [
        jax.random.uniform(k, (nhidden, nhidden), jnp.float32, -stdv_h, stdv_h)
        for k in conv_keys
    ]
    bound0 = 1.0 / math.sqrt(nfeat)
    fc0_w = jax.random.uniform(k_w0, (nfeat, nhidden), jnp.float32, -bound0, bound0)
    fc0_b = jax.random.uniform(k_b0, (1, nhidden), jnp.float32, -bound0, bound0)
    bound1 = 1.0 / math.sqrt(nhidden)
    fc1_w = jax.random.uniform(k_w1, (nhidden, nclass), jnp.float32, -bound1, bound1)
    fc1_b = jax.random.uniform(k_b1, (1, nclass), jnp.float32, -bound1, bound1)

    # Make test data bf16-representable (kernel runs the MXU in bf16).
    x, adj = _bf16_rt(x), _bf16_rt(adj)
    conv_ws = [_bf16_rt(w) for w in conv_ws]
    fc0_w, fc0_b = _bf16_rt(fc0_w), _bf16_rt(fc0_b)
    fc1_w, fc1_b = _bf16_rt(fc1_w), _bf16_rt(fc1_b)

    params = {
        "fc0_w": fc0_w, "fc0_b": fc0_b,
        "fc1_w": fc1_w, "fc1_b": fc1_b,
        "conv_ws": conv_ws,
    }

    out = gcnii_ppi_forward(x, adj, params, lamda=lamda, alpha=alpha)
    out = jax.block_until_ready(out)

    assert out.shape == (N, nclass) and out.dtype == jnp.float32
    ref = _reference(x, adj, params, lamda, alpha)
    # bf16 compute vs f32 reference over an L-layer stack -> relaxed tolerance.
    assert np.allclose(np.asarray(out), ref, atol=5e-2, rtol=5e-2), "mismatch vs reference"
    print("KERNEL_OK")
</pallas_src>

<mosaic_0001>
module attributes {stable_mosaic.version = 11 : i64} {
  func.func @_fused_gcnii_kernel(%arg0: i32, %arg1: memref<32x128xbf16, #tpu.memory_space<vmem>>, %arg2: memref<32x32xbf16, #tpu.memory_space<vmem>>, %arg3: memref<128x128xbf16, #tpu.memory_space<vmem>>, %arg4: memref<1x128xf32, #tpu.memory_space<vmem>>, %arg5: memref<1x128x128xbf16, #tpu.memory_space<vmem>>, %arg6: memref<128x128xbf16, #tpu.memory_space<vmem>>, %arg7: memref<1x128xf32, #tpu.memory_space<vmem>>, %arg8: memref<32x128xf32, #tpu.memory_space<vmem>>, %arg9: memref<32x128xbf16, #tpu.memory_space<vmem>>, %arg10: memref<32x128xbf16, #tpu.memory_space<vmem>>) attributes {dimension_semantics = [#tpu.dimension_semantics<arbitrary>], iteration_bounds = array<i64: 3>, scalar_prefetch = 0 : i64, scratch_operands = 2 : i64, tpu.core_type = #tpu.core_type<tc>, window_params = [{pipeline_mode = #tpu.pipeline_mode<synchronous>, transform_indices = @transform_0, window_bounds = array<i64: 32, 128>}, {pipeline_mode = #tpu.pipeline_mode<synchronous>, transform_indices = @transform_1, window_bounds = array<i64: 32, 32>}, {pipeline_mode = #tpu.pipeline_mode<synchronous>, transform_indices = @transform_2, window_bounds = array<i64: 128, 128>}, {pipeline_mode = #tpu.pipeline_mode<synchronous>, transform_indices = @transform_3, window_bounds = array<i64: 1, 128>}, {transform_indices = @transform_4, window_bounds = array<i64: 1, 128, 128>}, {pipeline_mode = #tpu.pipeline_mode<synchronous>, transform_indices = @transform_5, window_bounds = array<i64: 128, 128>}, {pipeline_mode = #tpu.pipeline_mode<synchronous>, transform_indices = @transform_6, window_bounds = array<i64: 1, 128>}, {pipeline_mode = #tpu.pipeline_mode<synchronous>, transform_indices = @transform_7, window_bounds = array<i64: 32, 128>}]} {
    %c0_i32 = arith.constant 0 : i32
    %0 = arith.cmpi eq, %arg0, %c0_i32 : i32
    %1 = arith.extui %0 : i1 to i32
    %c0_i32_0 = arith.constant 0 : i32
    %2 = arith.cmpi ne, %1, %c0_i32_0 : i32
    scf.if %2 {
      %c0_14 = arith.constant 0 : index
      %c0_15 = arith.constant 0 : index
      %22 = vector.load %arg1[%c0_14, %c0_15] : memref<32x128xbf16, #tpu.memory_space<vmem>>, vector<32x128xbf16>
      %c0_16 = arith.constant 0 : index
      %c0_17 = arith.constant 0 : index
      %23 = vector.load %arg3[%c0_16, %c0_17] : memref<128x128xbf16, #tpu.memory_space<vmem>>, vector<128x128xbf16>
      %cst_18 = arith.constant dense<0.000000e+00> : vector<32x128xf32>
      %24 = tpu.matmul %22, %23, %cst_18 {dimension_numbers = #tpu.dot_dimension_numbers<[1], [0], [0], [1], [0, 0, 1, 1], [], []>} : vector<32x128xbf16>, vector<128x128xbf16>, vector<32x128xf32> -> vector<32x128xf32>
      %c0_19 = arith.constant 0 : index
      %c0_20 = arith.constant 0 : index
      %25 = vector.load %arg4[%c0_19, %c0_20] : memref<1x128xf32, #tpu.memory_space<vmem>>, vector<1x128xf32>
      %26 = vector.broadcast %25 : vector<1x128xf32> to vector<32x128xf32>
      %27 = arith.addf %24, %26 : vector<32x128xf32>
      %cst_21 = arith.constant 0.000000e+00 : f32
      %28 = vector.broadcast %cst_21 : f32 to vector<32x128xf32>
      %29 = arith.maximumf %27, %28 : vector<32x128xf32>
      %30 = arith.truncf %29 : vector<32x128xf32> to vector<32x128xbf16>
      %c0_22 = arith.constant 0 : index
      %c0_23 = arith.constant 0 : index
      %31 = vector.load %arg9[%c0_22, %c0_23] : memref<32x128xbf16, #tpu.memory_space<vmem>>, vector<32x128xbf16>
      tpu.vector_store %arg9[%c0_22, %c0_23], %30 {strides = array<i32>} : memref<32x128xbf16, #tpu.memory_space<vmem>>, vector<32x128xbf16>,
      %cst_24 = arith.constant 1.000000e-01 : f32
      %32 = vector.broadcast %cst_24 : f32 to vector<32x128xf32>
      %33 = arith.mulf %32, %29 : vector<32x128xf32>
      %34 = arith.truncf %33 : vector<32x128xf32> to vector<32x128xbf16>
      %c0_25 = arith.constant 0 : index
      %c0_26 = arith.constant 0 : index
      %35 = vector.load %arg10[%c0_25, %c0_26] : memref<32x128xbf16, #tpu.memory_space<vmem>>, vector<32x128xbf16>
      tpu.vector_store %arg10[%c0_25, %c0_26], %34 {strides = array<i32>} : memref<32x128xbf16, #tpu.memory_space<vmem>>, vector<32x128xbf16>,
    } else {
    }
    %c0 = arith.constant 0 : index
    %c0_1 = arith.constant 0 : index
    %3 = vector.load %arg9[%c0, %c0_1] : memref<32x128xbf16, #tpu.memory_space<vmem>>, vector<32x128xbf16>
    %c0_2 = arith.constant 0 : index
    %c0_3 = arith.constant 0 : index
    %4 = vector.load %arg2[%c0_2, %c0_3] : memref<32x32xbf16, #tpu.memory_space<vmem>>, vector<32x32xbf16>
    %cst = arith.constant dense<0.000000e+00> : vector<32x128xf32>
    %5 = tpu.matmul %4, %3, %cst {dimension_numbers = #tpu.dot_dimension_numbers<[1], [0], [0], [1], [0, 0, 1, 1], [], []>} : vector<32x32xbf16>, vector<32x128xbf16>, vector<32x128xf32> -> vector<32x128xf32>
    %c0_4 = arith.constant 0 : index
    %c0_5 = arith.constant 0 : index
    %6 = vector.load %arg10[%c0_4, %c0_5] : memref<32x128xbf16, #tpu.memory_space<vmem>>, vector<32x128xbf16>
    %7 = arith.extf %6 : vector<32x128xbf16> to vector<32x128xf32>
    %8 = arith.addf %5, %7 : vector<32x128xf32>
    %9 = arith.truncf %8 : vector<32x128xf32> to vector<32x128xbf16>
    %c0_6 = arith.constant 0 : index
    %c0_7 = arith.constant 0 : index
    %c0_8 = arith.constant 0 : index
    %10 = vector.load %arg5[%c0_6, %c0_7, %c0_8] : memref<1x128x128xbf16, #tpu.memory_space<vmem>>, vector<1x128x128xbf16>
    %11 = vector.shape_cast %10 : vector<1x128x128xbf16> to vector<128x128xbf16>
    %cst_9 = arith.constant dense<0.000000e+00> : vector<32x128xf32>
    %12 = tpu.matmul %9, %11, %cst_9 {dimension_numbers = #tpu.dot_dimension_numbers<[1], [0], [0], [1], [0, 0, 1, 1], [], []>} : vector<32x128xbf16>, vector<128x128xbf16>, vector<32x128xf32> -> vector<32x128xf32>
    %13 = arith.extf %3 : vector<32x128xbf16> to vector<32x128xf32>
    %14 = arith.addf %12, %13 : vector<32x128xf32>
    %cst_10 = arith.constant 0.000000e+00 : f32
    %15 = vector.broadcast %cst_10 : f32 to vector<32x128xf32>
    %16 = arith.maximumf %14, %15 : vector<32x128xf32>
    %17 = arith.truncf %16 : vector<32x128xf32> to vector<32x128xbf16>
    %c0_11 = arith.constant 0 : index
    %c0_12 = arith.constant 0 : index
    %18 = vector.load %arg9[%c0_11, %c0_12] : memref<32x128xbf16, #tpu.memory_space<vmem>>, vector<32x128xbf16>
    tpu.vector_store %arg9[%c0_11, %c0_12], %17 {strides = array<i32>} : memref<32x128xbf16, #tpu.memory_space<vmem>>, vector<32x128xbf16>,
    %c2_i32 = arith.constant 2 : i32
    %19 = arith.cmpi eq, %arg0, %c2_i32 : i32
    %20 = arith.extui %19 : i1 to i32
    %c0_i32_13 = arith.constant 0 : i32
    %21 = arith.cmpi ne, %20, %c0_i32_13 : i32
    scf.if %21 {
      %c0_14 = arith.constant 0 : index
      %c0_15 = arith.constant 0 : index
      %22 = vector.load %arg6[%c0_14, %c0_15] : memref<128x128xbf16, #tpu.memory_space<vmem>>, vector<128x128xbf16>
      %cst_16 = arith.constant dense<0.000000e+00> : vector<32x128xf32>
      %23 = tpu.matmul %17, %22, %cst_16 {dimension_numbers = #tpu.dot_dimension_numbers<[1], [0], [0], [1], [0, 0, 1, 1], [], []>} : vector<32x128xbf16>, vector<128x128xbf16>, vector<32x128xf32> -> vector<32x128xf32>
      %c0_17 = arith.constant 0 : index
      %c0_18 = arith.constant 0 : index
      %24 = vector.load %arg7[%c0_17, %c0_18] : memref<1x128xf32, #tpu.memory_space<vmem>>, vector<1x128xf32>
      %25 = vector.broadcast %24 : vector<1x128xf32> to vector<32x128xf32>
      %26 = arith.addf %23, %25 : vector<32x128xf32>
      %c0_19 = arith.constant 0 : index
      %c0_20 = arith.constant 0 : index
      %27 = vector.load %arg8[%c0_19, %c0_20] : memref<32x128xf32, #tpu.memory_space<vmem>>, vector<32x128xf32>
      tpu.vector_store %arg8[%c0_19, %c0_20], %26 {strides = array<i32>} : memref<32x128xf32, #tpu.memory_space<vmem>>, vector<32x128xf32>,
    } else {
    }
    return
  }
  func.func @transform_0(%arg0: i32) -> (i32, i32) {
    %c0_i32 = arith.constant 0 : i32
    %c0_i32_0 = arith.constant 0 : i32
    %c0_i32_1 = arith.constant 0 : i32
    return %c0_i32, %c0_i32_0 : i32, i32
  }
  func.func @transform_1(%arg0: i32) -> (i32, i32) {
    %c0_i32 = arith.constant 0 : i32
    %c0_i32_0 = arith.constant 0 : i32
    %c0_i32_1 = arith.constant 0 : i32
    return %c0_i32, %c0_i32_0 : i32, i32
  }
  func.func @transform_2(%arg0: i32) -> (i32, i32) {
    %c0_i32 = arith.constant 0 : i32
    %c0_i32_0 = arith.constant 0 : i32
    %c0_i32_1 = arith.constant 0 : i32
    return %c0_i32, %c0_i32_0 : i32, i32
  }
  func.func @transform_3(%arg0: i32) -> (i32, i32) {
    %c0_i32 = arith.constant 0 : i32
    %c0_i32_0 = arith.constant 0 : i32
    %c0_i32_1 = arith.constant 0 : i32
    return %c0_i32, %c0_i32_0 : i32, i32
  }
  func.func @transform_4(%arg0: i32) -> (i32, i32, i32) {
    %c0_i32 = arith.constant 0 : i32
    %c0_i32_0 = arith.constant 0 : i32
    %c0_i32_1 = arith.constant 0 : i32
    return %arg0, %c0_i32, %c0_i32_0 : i32, i32, i32
  }
  func.func @transform_5(%arg0: i32) -> (i32, i32) {
    %c0_i32 = arith.constant 0 : i32
    %c0_i32_0 = arith.constant 0 : i32
    %c0_i32_1 = arith.constant 0 : i32
    return %c0_i32, %c0_i32_0 : i32, i32
  }
  func.func @transform_6(%arg0: i32) -> (i32, i32) {
    %c0_i32 = arith.constant 0 : i32
    %c0_i32_0 = arith.constant 0 : i32
    %c0_i32_1 = arith.constant 0 : i32
    return %c0_i32, %c0_i32_0 : i32, i32
  }
  func.func @transform_7(%arg0: i32) -> (i32, i32) {
    %c0_i32 = arith.constant 0 : i32
    %c0_i32_0 = arith.constant 0 : i32
    %c0_i32_1 = arith.constant 0 : i32
    return %c0_i32, %c0_i32_0 : i32, i32
  }
}

module attributes {stable_mosaic.version = 11 : i64} {
  func.func @_fused_gcnii_kernel(%arg0: i32, %arg1: memref<32x128xbf16, #tpu.memory_space<vmem>>, %arg2: memref<32x32xbf16, #tpu.memory_space<vmem>>, %arg3: memref<128x128xbf16, #tpu.memory_space<vmem>>, %arg4: memref<1x128xf32, #tpu.memory_space<vmem>>, %arg5: memref<1x128x128xbf16, #tpu.memory_space<vmem>>, %arg6: memref<128x128xbf16, #tpu.memory_space<vmem>>, %arg7: memref<1x128xf32, #tpu.memory_space<vmem>>, %arg8: memref<32x128xf32, #tpu.memory_space<vmem>>, %arg9: memref<32x128xbf16, #tpu.memory_space<vmem>>, %arg10: memref<32x128xbf16, #tpu.memory_space<vmem>>) attributes {dimension_semantics = [#tpu.dimension_semantics<arbitrary>], iteration_bounds = array<i64: 3>, scalar_prefetch = 0 : i64, scratch_operands = 2 : i64, tpu.core_type = #tpu.core_type<tc>, window_params = [{pipeline_mode = #tpu.pipeline_mode<synchronous>, transform_indices = @transform_0, window_bounds = array<i64: 32, 128>}, {pipeline_mode = #tpu.pipeline_mode<synchronous>, transform_indices = @transform_1, window_bounds = array<i64: 32, 32>}, {pipeline_mode = #tpu.pipeline_mode<synchronous>, transform_indices = @transform_2, window_bounds = array<i64: 128, 128>}, {pipeline_mode = #tpu.pipeline_mode<synchronous>, transform_indices = @transform_3, window_bounds = array<i64: 1, 128>}, {transform_indices = @transform_4, window_bounds = array<i64: 1, 128, 128>}, {pipeline_mode = #tpu.pipeline_mode<synchronous>, transform_indices = @transform_5, window_bounds = array<i64: 128, 128>}, {pipeline_mode = #tpu.pipeline_mode<synchronous>, transform_indices = @transform_6, window_bounds = array<i64: 1, 128>}, {pipeline_mode = #tpu.pipeline_mode<synchronous>, transform_indices = @transform_7, window_bounds = array<i64: 32, 128>}]} {
    %c0_i32 = arith.constant 0 : i32
    %0 = arith.cmpi eq, %arg0, %c0_i32 : i32
    %1 = arith.extui %0 : i1 to i32
    %c0_i32_0 = arith.constant 0 : i32
    %2 = arith.cmpi ne, %1, %c0_i32_0 : i32
    scf.if %2 {
      %c0_14 = arith.constant 0 : index
      %c0_15 = arith.constant 0 : index
      %22 = vector.load %arg1[%c0_14, %c0_15] : memref<32x128xbf16, #tpu.memory_space<vmem>>, vector<32x128xbf16>
      %c0_16 = arith.constant 0 : index
      %c0_17 = arith.constant 0 : index
      %23 = vector.load %arg3[%c0_16, %c0_17] : memref<128x128xbf16, #tpu.memory_space<vmem>>, vector<128x128xbf16>
      %cst_18 = arith.constant dense<0.000000e+00> : vector<32x128xf32>
      %24 = tpu.matmul %22, %23, %cst_18 {dimension_numbers = #tpu.dot_dimension_numbers<[1], [0], [0], [1], [0, 0, 1, 1], [], []>} : vector<32x128xbf16>, vector<128x128xbf16>, vector<32x128xf32> -> vector<32x128xf32>
      %c0_19 = arith.constant 0 : index
      %c0_20 = arith.constant 0 : index
      %25 = vector.load %arg4[%c0_19, %c0_20] : memref<1x128xf32, #tpu.memory_space<vmem>>, vector<1x128xf32>
      %26 = vector.broadcast %25 : vector<1x128xf32> to vector<32x128xf32>
      %27 = arith.addf %24, %26 : vector<32x128xf32>
      %cst_21 = arith.constant 0.000000e+00 : f32
      %28 = vector.broadcast %cst_21 : f32 to vector<32x128xf32>
      %29 = arith.maximumf %27, %28 : vector<32x128xf32>
      %30 = arith.truncf %29 : vector<32x128xf32> to vector<32x128xbf16>
      %c0_22 = arith.constant 0 : index
      %c0_23 = arith.constant 0 : index
      %31 = vector.load %arg9[%c0_22, %c0_23] : memref<32x128xbf16, #tpu.memory_space<vmem>>, vector<32x128xbf16>
      tpu.vector_store %arg9[%c0_22, %c0_23], %30 {strides = array<i32>} : memref<32x128xbf16, #tpu.memory_space<vmem>>, vector<32x128xbf16>,
      %cst_24 = arith.constant 1.000000e-01 : f32
      %32 = vector.broadcast %cst_24 : f32 to vector<32x128xf32>
      %33 = arith.mulf %32, %29 : vector<32x128xf32>
      %34 = arith.truncf %33 : vector<32x128xf32> to vector<32x128xbf16>
      %c0_25 = arith.constant 0 : index
      %c0_26 = arith.constant 0 : index
      %35 = vector.load %arg10[%c0_25, %c0_26] : memref<32x128xbf16, #tpu.memory_space<vmem>>, vector<32x128xbf16>
      tpu.vector_store %arg10[%c0_25, %c0_26], %34 {strides = array<i32>} : memref<32x128xbf16, #tpu.memory_space<vmem>>, vector<32x128xbf16>,
    } else {
    }
    %c0 = arith.constant 0 : index
    %c0_1 = arith.constant 0 : index
    %3 = vector.load %arg9[%c0, %c0_1] : memref<32x128xbf16, #tpu.memory_space<vmem>>, vector<32x128xbf16>
    %c0_2 = arith.constant 0 : index
    %c0_3 = arith.constant 0 : index
    %4 = vector.load %arg2[%c0_2, %c0_3] : memref<32x32xbf16, #tpu.memory_space<vmem>>, vector<32x32xbf16>
    %cst = arith.constant dense<0.000000e+00> : vector<32x128xf32>
    %5 = tpu.matmul %4, %3, %cst {dimension_numbers = #tpu.dot_dimension_numbers<[1], [0], [0], [1], [0, 0, 1, 1], [], []>} : vector<32x32xbf16>, vector<32x128xbf16>, vector<32x128xf32> -> vector<32x128xf32>
    %c0_4 = arith.constant 0 : index
    %c0_5 = arith.constant 0 : index
    %6 = vector.load %arg10[%c0_4, %c0_5] : memref<32x128xbf16, #tpu.memory_space<vmem>>, vector<32x128xbf16>
    %7 = arith.extf %6 : vector<32x128xbf16> to vector<32x128xf32>
    %8 = arith.addf %5, %7 : vector<32x128xf32>
    %9 = arith.truncf %8 : vector<32x128xf32> to vector<32x128xbf16>
    %c0_6 = arith.constant 0 : index
    %c0_7 = arith.constant 0 : index
    %c0_8 = arith.constant 0 : index
    %10 = vector.load %arg5[%c0_6, %c0_7, %c0_8] : memref<1x128x128xbf16, #tpu.memory_space<vmem>>, vector<1x128x128xbf16>
    %11 = vector.shape_cast %10 : vector<1x128x128xbf16> to vector<128x128xbf16>
    %cst_9 = arith.constant dense<0.000000e+00> : vector<32x128xf32>
    %12 = tpu.matmul %9, %11, %cst_9 {dimension_numbers = #tpu.dot_dimension_numbers<[1], [0], [0], [1], [0, 0, 1, 1], [], []>} : vector<32x128xbf16>, vector<128x128xbf16>, vector<32x128xf32> -> vector<32x128xf32>
    %13 = arith.extf %3 : vector<32x128xbf16> to vector<32x128xf32>
    %14 = arith.addf %12, %13 : vector<32x128xf32>
    %cst_10 = arith.constant 0.000000e+00 : f32
    %15 = vector.broadcast %cst_10 : f32 to vector<32x128xf32>
    %16 = arith.maximumf %14, %15 : vector<32x128xf32>
    %17 = arith.truncf %16 : vector<32x128xf32> to vector<32x128xbf16>
    %c0_11 = arith.constant 0 : index
    %c0_12 = arith.constant 0 : index
    %18 = vector.load %arg9[%c0_11, %c0_12] : memref<32x128xbf16, #tpu.memory_space<vmem>>, vector<32x128xbf16>
    tpu.vector_store %arg9[%c0_11, %c0_12], %17 {strides = array<i32>} : memref<32x128xbf16, #tpu.memory_space<vmem>>, vector<32x128xbf16>,
    %c2_i32 = arith.constant 2 : i32
    %19 = arith.cmpi eq, %arg0, %c2_i32 : i32
    %20 = arith.extui %19 : i1 to i32
    %c0_i32_13 = arith.constant 0 : i32
    %21 = arith.cmpi ne, %20, %c0_i32_13 : i32
    scf.if %21 {
      %c0_14 = arith.constant 0 : index
      %c0_15 = arith.constant 0 : index
      %22 = vector.load %arg6[%c0_14, %c0_15] : memref<128x128xbf16, #tpu.memory_space<vmem>>, vector<128x128xbf16>
      %cst_16 = arith.constant dense<0.000000e+00> : vector<32x128xf32>
      %23 = tpu.matmul %17, %22, %cst_16 {dimension_numbers = #tpu.dot_dimension_numbers<[1], [0], [0], [1], [0, 0, 1, 1], [], []>} : vector<32x128xbf16>, vector<128x128xbf16>, vector<32x128xf32> -> vector<32x128xf32>
      %c0_17 = arith.constant 0 : index
      %c0_18 = arith.constant 0 : index
      %24 = vector.load %arg7[%c0_17, %c0_18] : memref<1x128xf32, #tpu.memory_space<vmem>>, vector<1x128xf32>
      %25 = vector.broadcast %24 : vector<1x128xf32> to vector<32x128xf32>
      %26 = arith.addf %23, %25 : vector<32x128xf32>
      %c0_19 = arith.constant 0 : index
      %c0_20 = arith.constant 0 : index
      %27 = vector.load %arg8[%c0_19, %c0_20] : memref<32x128xf32, #tpu.memory_space<vmem>>, vector<32x128xf32>
      tpu.vector_store %arg8[%c0_19, %c0_20], %26 {strides = array<i32>} : memref<32x128xf32, #tpu.memory_space<vmem>>, vector<32x128xf32>,
    } else {
    }
    return
  }
  func.func @transform_0(%arg0: i32) -> (i32, i32) {
    %c0_i32 = arith.constant 0 : i32
    %c0_i32_0 = arith.constant 0 : i32
    %c0_i32_1 = arith.constant 0 : i32
    return %c0_i32, %c0_i32_0 : i32, i32
  }
  func.func @transform_1(%arg0: i32) -> (i32, i32) {
    %c0_i32 = arith.constant 0 : i32
    %c0_i32_0 = arith.constant 0 : i32
    %c0_i32_1 = arith.constant 0 : i32
    return %c0_i32, %c0_i32_0 : i32, i32
  }
  func.func @transform_2(%arg0: i32) -> (i32, i32) {
    %c0_i32 = arith.constant 0 : i32
    %c0_i32_0 = arith.constant 0 : i32
    %c0_i32_1 = arith.constant 0 : i32
    return %c0_i32, %c0_i32_0 : i32, i32
  }
  func.func @transform_3(%arg0: i32) -> (i32, i32) {
    %c0_i32 = arith.constant 0 : i32
    %c0_i32_0 = arith.constant 0 : i32
    %c0_i32_1 = arith.constant 0 : i32
    return %c0_i32, %c0_i32_0 : i32, i32
  }
  func.func @transform_4(%arg0: i32) -> (i32, i32, i32) {
    %c0_i32 = arith.constant 0 : i32
    %c0_i32_0 = arith.constant 0 : i32
    %c0_i32_1 = arith.constant 0 : i32
    return %arg0, %c0_i32, %c0_i32_0 : i32, i32, i32
  }
  func.func @transform_5(%arg0: i32) -> (i32, i32) {
    %c0_i32 = arith.constant 0 : i32
    %c0_i32_0 = arith.constant 0 : i32
    %c0_i32_1 = arith.constant 0 : i32
    return %c0_i32, %c0_i32_0 : i32, i32
  }
  func.func @transform_6(%arg0: i32) -> (i32, i32) {
    %c0_i32 = arith.constant 0 : i32
    %c0_i32_0 = arith.constant 0 : i32
    %c0_i32_1 = arith.constant 0 : i32
    return %c0_i32, %c0_i32_0 : i32, i32
  }
  func.func @transform_7(%arg0: i32) -> (i32, i32) {
    %c0_i32 = arith.constant 0 : i32
    %c0_i32_0 = arith.constant 0 : i32
    %c0_i32_1 = arith.constant 0 : i32
    return %c0_i32, %c0_i32_0 : i32, i32
  }
}

</mosaic_0001>

<bundles_post_ra>
// kernel: tpu_custom_call.1
= control target key start
LH: loop header
LB: loop body
LE: loop exit
PB: predicated region body
PF: predicated region fallthrough
CT: control target
= control target key end

     0   :  { %12 = vsyncpa [#allocation5], 0  ;;  %s1768_s0 = inlined_call_operand.hbm [shape: bf16[32,128], index: 0, kind: input, shape index: {}]   ;;  %s1769_s1 = inlined_call_operand.hbm [shape: bf16[32,32], index: 1, kind: input, shape index: {}]   ;;  %s1770_s2 = inlined_call_operand.hbm [shape: bf16[128,128], index: 2, kind: input, shape index: {}]   ;;  %s1771_s3 = inlined_call_operand.vmem [shape: f32[1,128], index: 3, kind: input, shape index: {}]   ;;  %s1772_s4 = inlined_call_operand.hbm [shape: bf16[3,128,128], index: 4, kind: input, shape index: {}]   ;;  %s1773_s5 = inlined_call_operand.hbm [shape: bf16[128,128], index: 5, kind: input, shape index: {}]   ;;  %s1774_s6 = inlined_call_operand.vmem [shape: f32[1,128], index: 6, kind: input, shape index: {}]   ;;  %s1775_s7 = inlined_call_operand.hbm [shape: f32[32,128], index: 7, kind: output, shape index: {}]  }
   0x1   :  { %13 = vsyncpa [#allocation8], 0 }
   0x2   :  { %14 = vsyncpa [#allocation11], 0 }
   0x3   :  { %16 = vsyncpa [#allocation11 + $0x1], 0 }
   0x4   :  { %17 = vsyncpa [#allocation6], 0  ;;  %s1478_s24 = smov 0   ;;  %s1480_s25 = smov 0  }
   0x5   :  { %s1482_s26 = smov 0   ;;  %s1484_s27 = smov 0  }
   0x6 LB: > { %s1497_s28 = sadd.s32 4294967295, %s1426_s27   ;;  %p127_p0 = scmp.ne.s32.totalorder %s1418_s25, %s1414_s24  ;;  %s1426_s27 = sphi %s1484_s27, %s1796_s27   ;;  %s1422_s26 = sphi %s1482_s26, %s1795_s26   ;;  %s1418_s25 = sphi %s1480_s25, %s1794_s25   ;;  %s1414_s24 = sphi %s1478_s24, %s1793_s24  }
   0x7   : > { %p1776_p1 = scmp.eq.s32.totalorder %s1497_s28, 0  ;;  %p933_p2 = scmp.ge.s32.totalorder %s1426_s27, 1 }
   0x8   : > { %p201_p3 = scmp.lt.s32.totalorder %s1426_s27, 4  ;;  %s1428_s8 = smov [#allocation7]  }
   0x9   : > { %p1506_p5 = por %p1776_p1, %p127_p0  ;;  %s226_s9 = sshll.u32 %s1428_s8, 4  ;;  %s1516_s9 = int_to_ptr.vmem [resolvable:$true] %s226_s9 }
   0xa   : > { %p1510_p6 = pnand %p933_p2, %p201_p3  ;;  %s1429_s11 = smov [#allocation12]  }
   0xb   : > { %s1779_s29 = scalar_select %p1506_p5, 1, 0 }
   0xc   : > { %s1780_s30 = scalar_select %p1510_p6, 1, 0 }
   0xd   : > { %p1111_p7 = pneg %p1510_p6  ;;  %s255_s12 = sshll.u32 %s1429_s11, 4  ;;  %s1524_s12 = int_to_ptr.vmem [resolvable:$true] %s255_s12 }
   0xe   : > { %s1430_s13 = smov [#allocation4]   ;;  %s1208_s17 = scalar_lea.hbm %s1769_s1, 256 }
   0xf   : > { %p1520_p8 = pnand %p1111_p7, %p1776_p1  ;;  %s1526_s14 = sshll.u32 %s1430_s13, 4  ;;  %s214_s14 = int_to_ptr.vmem [resolvable:$true] %s1526_s14 }
  0x10   : > { %p1209_p9 = scmp.ne.s32.totalorder %s1769_s1, %s1208_s17  ;;  %p1215_p13 = scmp.lt.u32.totalorder %s1208_s17, %s1769_s1 }
  0x11   : > { %p1536_p10 = pneg %p1520_p8 }
  0x13   : > { %p1211_p11 = pnand %p1536_p10, %p1209_p9 }
  0x15   : > { %p1212_p12 = pneg %p1211_p11 }
  0x17   : > { %p1217_p0 = pnand %p1215_p13, %p1212_p12 }
  0x19   : > { %1220 = shalt.err (!%p1217_p0)
}
  0x1a   : > { %s1221_s23 = scalar_lea.vmem %s1516_s9, 256  ;;  %p1229_p4 = scmp.lt.s32.totalorder %s1516_s9, %s1516_s9 }
  0x1b   : > { %p1222_p2 = scmp.ne.s32.totalorder %s1516_s9, %s1221_s23  ;;  %p1230_p1 = scmp.lt.s32.totalorder %s1221_s23, %s1221_s23 }
  0x1d   : > { %p1224_p3 = pnand %p1222_p2, %p1536_p10  ;;  %p1231_p9 = por %p1230_p1, %p1229_p4 }
  0x1f   : > { %p1225_p7 = pneg %p1224_p3 }
  0x21   : > { %p1232_p11 = pnand %p1231_p9, %p1225_p7 }
  0x23   : > { %1235 = shalt.err (!%p1232_p11)
}
  0x24   : > { %s1431_s24 = smov 64   ;;  %s1432_s8 = smov 4  }
  0x25   : > { %1117 = dma.hbm_to_vmem [thread:$0]  (!%p1520_p8), %s1769_s1, 256, %s1516_s9, [#allocation8], %s1431_s24, %s1431_s24, %s1432_s8  }
  0x26   : > { %s1236_s17 = scalar_lea.hbm %s1773_s5, 1024 }
  0x27   : > { %p1237_p1 = scmp.ne.s32.totalorder %s1773_s5, %s1236_s17  ;;  %p1243_p13 = scmp.lt.u32.totalorder %s1236_s17, %s1773_s5 }
  0x29   : > { %p1239_p4 = pnand %p1237_p1, %p1536_p10 }
  0x2b   : > { %p1240_p12 = pneg %p1239_p4 }
  0x2d   : > { %p1245_p0 = pnand %p1243_p13, %p1240_p12 }
  0x2f   : > { %1248 = shalt.err (!%p1245_p0)
}
  0x30   : > { %s1249_s9 = scalar_lea.vmem %s1524_s12, 1024  ;;  %p1257_p9 = scmp.lt.s32.totalorder %s1524_s12, %s1524_s12 }
  0x31   : > { %p1250_p2 = scmp.ne.s32.totalorder %s1524_s12, %s1249_s9  ;;  %p1258_p11 = scmp.lt.s32.totalorder %s1249_s9, %s1249_s9 }
  0x33   : > { %p1252_p3 = pnand %p1250_p2, %p1536_p10  ;;  %p1259_p1 = por %p1258_p11, %p1257_p9 }
  0x35   : > { %p1253_p7 = pneg %p1252_p3 }
  0x37   : > { %p1260_p4 = pnand %p1259_p1, %p1253_p7 }
  0x39   : > { %1263 = shalt.err (!%p1260_p4)
}
  0x3a   : > { %1123 = dma.hbm_to_vmem [thread:$0]  (!%p1520_p8), %s1773_s5, 1024, %s1524_s12, [#allocation11], %s1431_s24, %s1431_s24, %s1432_s8  }
  0x3b   : > { %s1264_s16 = scalar_lea.hbm %s1768_s0, 256 }
  0x3c   : > { %p1265_p12 = scmp.ne.s32.totalorder %s1768_s0, %s1264_s16  ;;  %p1271_p2 = scmp.lt.u32.totalorder %s1264_s16, %s1768_s0 }
  0x3e   : > { %p1267_p13 = pnand %p1265_p12, %p1536_p10 }
  0x40   : > { %p1268_p0 = pneg %p1267_p13 }
  0x42   : > { %p1273_p3 = pnand %p1271_p2, %p1268_p0 }
  0x44   : > { %1276 = shalt.err (!%p1273_p3)
}
  0x45   : > { %s1277_s22 = scalar_lea.vmem %s214_s14, 256  ;;  %p1285_p1 = scmp.lt.s32.totalorder %s214_s14, %s214_s14 }
  0x46   : > { %p1278_p7 = scmp.ne.s32.totalorder %s214_s14, %s1277_s22  ;;  %p1286_p4 = scmp.lt.s32.totalorder %s1277_s22, %s1277_s22 }
  0x48   : > { %p1280_p9 = pnand %p1278_p7, %p1536_p10  ;;  %p1287_p5 = por %p1286_p4, %p1285_p1 }
  0x4a   : > { %p1281_p11 = pneg %p1280_p9 }
  0x4c   : > { %p1288_p6 = pnand %p1287_p5, %p1281_p11 }
  0x4e   : > { %1291 = shalt.err (!%p1288_p6)
}
  0x4f   : > { %1114 = dma.hbm_to_vmem [thread:$0]  (!%p1520_p8), %s1768_s0, 256, %s214_s14, [#allocation5], %s1431_s24, %s1431_s24, %s1432_s8  }
  0x50   : > { %s1433_s23 = smov [#allocation9]   ;;  %s1292_s16 = scalar_lea.hbm %s1770_s2, 1024 }
  0x51   : > { %s239_s11 = sshll.u32 %s1433_s23, 4  ;;  %p1293_p5 = scmp.ne.s32.totalorder %s1770_s2, %s1292_s16  ;;  %s240_s11 = int_to_ptr.vmem [resolvable:$true] %s239_s11 }
  0x52   : > { %p1299_p13 = scmp.lt.u32.totalorder %s1292_s16, %s1770_s2 }
  0x53   : > { %p1295_p6 = pnand %p1293_p5, %p1536_p10 }
  0x55   : > { %p1296_p12 = pneg %p1295_p6 }
  0x57   : > { %p1301_p0 = pnand %p1299_p13, %p1296_p12 }
  0x59   : > { %1304 = shalt.err (!%p1301_p0)
}
  0x5a   : > { %s1305_s14 = scalar_lea.vmem %s240_s11, 1024  ;;  %p1313_p9 = scmp.lt.s32.totalorder %s240_s11, %s240_s11 }
  0x5b   : > { %p1306_p2 = scmp.ne.s32.totalorder %s240_s11, %s1305_s14  ;;  %p1314_p11 = scmp.lt.s32.totalorder %s1305_s14, %s1305_s14 }
  0x5d   : > { %p1308_p3 = pnand %p1306_p2, %p1536_p10  ;;  %p1315_p1 = por %p1314_p11, %p1313_p9 }
  0x5f   : > { %p1309_p7 = pneg %p1308_p3 }
  0x61   : > { %p1316_p4 = pnand %p1315_p1, %p1309_p7 }
  0x63   : > { %1319 = shalt.err (!%p1316_p4)
}
  0x64   : > { %1120 = dma.hbm_to_vmem [thread:$0]  (!%p1520_p8), %s1770_s2, 1024, %s240_s11, [#allocation8], %s1431_s24, %s1431_s24, %s1432_s8  }
  0x65   : > { %s1630_s20 = sadd.s32 1, %s1426_s27   ;;  %s114_s10 = sadd.s32 1, %s1422_s26 }
  0x66   : > { %s111_s9 = ssub.s32 %s1426_s27, %s1630_s20  ;;  %p121_p10 = scmp.ne.s32.totalorder %s1422_s26, %s1418_s25 }
  0x67   : > { %p112_p5 = scmp.eq.s32.totalorder %s111_s9, 0  ;;  %p122_p6 = scmp.eq.s32.totalorder %s1426_s27, 0 }
  0x68   : > { %p1132_p12 = scmp.lt.s32.totalorder %s1426_s27, 3  ;;  %s272_s23 = sand.u32 1, %s1426_s27  }
  0x69   : > { %s1641_s13 = scalar_select %p112_p5, %s1422_s26, %s114_s10  }
  0x6a   : > { %p123_p13 = por %p122_p6, %p121_p10  ;;  %s274_s15 = sand.u32 1, %s1422_s26  }
  0x6b   : > { %s986_s16 = sshll.u32 %s1426_s27, 10  ;;  %s939_s17 = sshll.u32 %s274_s15, 6 }
  0x6c   : > { %s1648_s11 = scalar_lea.hbm %s1772_s4, %s986_s16  ;;  %p1650_p8 = pnand %p1132_p12, %p123_p13 }
  0x6d   : > { %s276_s14 = scalar_lea.vmem [#allocation10], %s939_s17  ;;  %s1656_s27 = scalar_lea.sflag [#allocation11], %s272_s23 }
  0x6e   : > { %s283_s22 = sshll.u32 %s276_s14, 4  ;;  %s1320_s12 = scalar_lea.hbm %s1648_s11, 1024  ;;  %s1654_s22 = int_to_ptr.vmem [resolvable:$true] %s283_s22 }
  0x6f   : > { %p1321_p0 = scmp.ne.s32.totalorder %s1648_s11, %s1320_s12  ;;  %p1322_p2 = pneg %p1650_p8 }
  0x70   : > { %s1325_s15 = scalar_lea.hbm %s1772_s4, 3072  ;;  %p1326_p9 = scmp.lt.u32.totalorder %s1648_s11, %s1772_s4 }
  0x71   : > { %p1323_p3 = pnand %p1322_p2, %p1321_p0  ;;  %p1327_p11 = scmp.lt.u32.totalorder %s1325_s15, %s1320_s12 }
  0x72   : > { %p1329_p4 = scmp.lt.u32.totalorder %s1320_s12, %s1648_s11 }
  0x73   : > { %p1324_p7 = pneg %p1323_p3  ;;  %p1328_p1 = por %p1327_p11, %p1326_p9 }
  0x75   : > { %p1330_p10 = por %p1329_p4, %p1328_p1 }
  0x77   : > { %p1331_p5 = pnand %p1330_p10, %p1324_p7 }
  0x79   : > { %1334 = shalt.err (!%p1331_p5)
}
  0x7a   : > { %s1335_s23 = scalar_lea.vmem %s1654_s22, 1024  ;;  %s1434_s17 = smov [#allocation10]  }
  0x7b   : > { %p1336_p6 = scmp.ne.s32.totalorder %s1654_s22, %s1335_s23  ;;  %s1340_s19 = sshll.u32 %s1434_s17, 4  ;;  %s1341_s19 = int_to_ptr.vmem [resolvable:$false] %s1340_s19 }
  0x7c   : > { %s1342_s14 = scalar_lea.vmem %s1341_s19, 2048  ;;  %p1343_p0 = scmp.lt.s32.totalorder %s1654_s22, %s1341_s19 }
  0x7d   : > { %p1338_p12 = pnand %p1336_p6, %p1322_p2  ;;  %p1344_p3 = scmp.lt.s32.totalorder %s1342_s14, %s1335_s23 }
  0x7f   : > { %p1339_p13 = pneg %p1338_p12  ;;  %p1345_p9 = por %p1344_p3, %p1343_p0 }
  0x81   : > { %p1346_p11 = pnand %p1345_p9, %p1339_p13 }
  0x83   : > { %1349 = shalt.err (!%p1346_p11)
}
  0x84   : > { %1127 = dma.hbm_to_vmem [thread:$0]  (!%p1650_p8), %s1648_s11, 1024, %s1654_s22, %s1656_s27, %s1431_s24, %s1431_s24, %s1432_s8  }
  0x85   : > { %p1784_p2 = scmp.ne.s32.totalorder %s1780_s30, 0 }
  0x86   : > { %p1785_p7 = scmp.eq.s32.totalorder (!%p1784_p2), %s1497_s28, 0 }
  0x87   : > { %295 = sbr.rel (%p1784_p2) target bundleno = 1112 (0x458), region = 48 }
  0x8e   : > { %1393 = dma.done.wait (%p1785_p7), [#allocation5], 256   ;;  %p1786_p1 = pmov %p1785_p7 }
  0x90   : > { %1395 = vsyncadd (%p1786_p1), [#allocation5], 4294967040  ;;  %p1787_p4 = pmov %p1786_p1 }
  0x91   : > { %p1788_p10 = pmov %p1786_p1 }
  0x92   : > { %1397 = dma.done.wait (%p1787_p4), [#allocation8], 1280  }
  0x93   : > { %1399 = vsyncadd (%p1788_p10), [#allocation8], 4294966016  ;;  %s309_s21 = sand.u32 1, %s1497_s28   ;;  %s311_s24 = sand.u32 1, %s1418_s25  }
  0x94   : > { %s946_s8 = sshll.u32 %s311_s24, 6  ;;  %s310_s30 = scalar_lea.sflag [#allocation11], %s309_s21 }
  0x95   : > { %s1699_s11 = scalar_lea.vmem [#allocation10], %s946_s8  ;;  %p1789_p8 = scmp.ne.s32.totalorder %s1779_s29, 0 }
  0x97   : > { %1401 = dma.done.wait (%p1789_p8), %s310_s30, 1024  }
  0x98   : > { %1403 = vsyncadd (%p1789_p8), %s310_s30, 4294966272  ;;  %p1790_p5 = pmov %p1786_p1 }
  0x99   : > { %p1791_p6 = pmov %p1786_p1 }
  0x9a   : > { %1405 = dma.done.wait (%p1790_p5), [#allocation11], 1024  }
  0x9b   : > { %1407 = vsyncadd (%p1791_p6), [#allocation11], 4294966272  ;;  %p1792_p12 = scmp.ne.s32.totalorder %s1497_s28, 0 }
  0x9c   : > { %v1180_v0 = vld [vmem:[#allocation9] sm:$0xff] (!%p1792_p12)   ;;  %v1181_v1 = vld [vmem:[#allocation9 + $0x8] sm:$0xff] (!%p1792_p12)   ;;  %v1182_v2 = vld [vmem:[#allocation9 + $0x10] sm:$0xff] (!%p1792_p12)  }
  0x9d   : > { %347 = sbr.rel (%p1792_p12) target bundleno = 413 (0x19d), region = 72  ;;  %1021 = vmatprep.subr.bf16.mxu0 (!%p1792_p12), %v1180_v0  ;;  %v1183_v3 = vld [vmem:[#allocation9 + $0x18] sm:$0xff] (!%p1792_p12)   ;;  %v1188_v4 = vld [vmem:[#allocation4] sm:$0xff] (!%p1792_p12)   ;;  %v1185_v6 = vld [vmem:[#allocation9 + $0x28] sm:$0xff] (!%p1792_p12)  }
  0x9e   : > { %1022 = vmatpush3.bf16.msra.mxu0 (!%p1792_p12), %v1180_v0  ;;  %1037 = vmatprep.mubr.bf16.mxu0 (!%p1792_p12), %v1188_v4  ;;  %v1184_v5 = vld [vmem:[#allocation9 + $0x20] sm:$0xff] (!%p1792_p12)   ;;  %v1186_v7 = vld [vmem:[#allocation9 + $0x30] sm:$0xff] (!%p1792_p12)   ;;  %v1187_v8 = vld [vmem:[#allocation9 + $0x38] sm:$0xff] (!%p1792_p12)  }
  0x9f   : > { %1023 = vmatprep.subr.bf16.mxu0 (!%p1792_p12), %v1181_v1  ;;  %v1189_v9 = vld [vmem:[#allocation4 + $0x8] sm:$0xff] (!%p1792_p12)   ;;  %v949_v10 = vld [vmem:[%s1771_s3] ss:$0 sm:$0xff] (!%p1792_p12) }
  0xa2   : > { %1024 = vmatpush3.bf16.msra.mxu0 (!%p1792_p12), %v1181_v1 }
  0xa3   : > { %1025 = vmatprep.subr.bf16.mxu0 (!%p1792_p12), %v1182_v2 }
  0xa6   : > { %1026 = vmatpush3.bf16.msra.mxu0 %v1182_v2 }
  0xa7   : > { %1027 = vmatprep.subr.bf16.mxu0 %v1183_v3 }
  0xaa   : > { %1028 = vmatpush3.bf16.msra.mxu0 %v1183_v3 }
  0xab   : > { %1029 = vmatprep.subr.bf16.mxu0 %v1184_v5 }
  0xae   : > { %1030 = vmatpush3.bf16.msra.mxu0 %v1184_v5 }
  0xaf   : > { %1031 = vmatprep.subr.bf16.mxu0 %v1185_v6 }
  0xb2   : > { %1032 = vmatpush3.bf16.msra.mxu0 %v1185_v6 }
  0xb3   : > { %1033 = vmatprep.subr.bf16.mxu0 %v1186_v7 }
  0xb6   : > { %1034 = vmatpush3.bf16.msra.mxu0 %v1186_v7 }
  0xb7   : > { %1035 = vmatprep.subr.bf16.mxu0 %v1187_v8 }
  0xba   : > { %1036 = vmatpush3.bf16.msra.mxu0 %v1187_v8 }
  0xbd   : > { %1038 = vmatmul.mubr.bf16.vlgmr.msra.gmra.mrb[0].mxu0 %v1189_v9 }
 0x190   : > { %v1039_v11 = vpop.f32.mrb[0].mxu0 }
 0x191   : > { %v478_v12 = vadd.f32 %v1039_v11, %v949_v10  ;;  %v469_v13 = vpop.f32.mrb[1].mxu0 }
 0x192   : > { %v470_v14 = vadd.f32 %v949_v10, %v469_v13  ;;  %v1040_v15 = vpop.f32.mrb[2].mxu0 }
 0x193   : > { %v486_v16 = vmax.f32 %v478_v12, 0.0  ;;  %v481_v17 = vadd.f32 %v1040_v15, %v949_v10  ;;  %v472_v18 = vpop.f32.mrb[3].mxu0 }
 0x194   : > { %v484_v19 = vmax.f32 %v470_v14, 0.0  ;;  %v473_v20 = vadd.f32 %v949_v10, %v472_v18 }
 0x195   : > { %v487_v21 = vmax.f32 %v481_v17, 0.0  ;;  %v494_v23 = vmul.f32 0.1, %v486_v16 }
 0x196   : > { %v485_v22 = vmax.f32 %v473_v20, 0.0  ;;  %v492_v26 = vmul.f32 0.1, %v484_v19 }
 0x197   : > { %v489_v24 = vpack.c.bf16 %v487_v21, %v486_v16  ;;  %v495_v25 = vmul.f32 0.1, %v487_v21 }
 0x198   : > { %v488_v27 = vpack.c.bf16 %v485_v22, %v484_v19  ;;  %v493_v28 = vmul.f32 0.1, %v485_v22 }
 0x199   : > { %491 = vst [vmem:[#allocation2 + $0x8] sm:$0xff] %v489_v24  ;;  %v497_v29 = vpack.c.bf16 %v495_v25, %v494_v23 }
 0x19a   : > { %490 = vst [vmem:[#allocation2] sm:$0xff] %v488_v27  ;;  %v496_v30 = vpack.c.bf16 %v493_v28, %v492_v26 }
 0x19b   : > { %499 = vst [vmem:[#allocation3 + $0x8] sm:$0xff] %v497_v29 }
 0x19c   : > { %498 = vst [vmem:[#allocation3] sm:$0xff] %v496_v30 }
 0x19d PF: > { %vm522_vm0 = vcmask 261120   ;;  %v1190_v33 = vld [vmem:[#allocation7] sm:$0xff]   ;;  %v1192_v34 = vld [vmem:[%s1699_s11] sm:$0xff]   ;;  %v1193_v35 = vld [vmem:[%s1699_s11 + $0x8] sm:$0xff]   ;;  %p972_p13 = scmp.ne.s32.totalorder %s1497_s28, 2 }
 0x19e   : > { %1045 = vmatprep.mubr.msk.bf16.mxu0 %vm522_vm0, %v1190_v33  ;;  %v1191_v36 = vld [vmem:[#allocation7 + $0x8] sm:$0xff]   ;;  %1049 = vmatprep.subr.bf16.mxu1 %v1192_v34  ;;  %v1194_v37 = vld [vmem:[%s1699_s11 + $0x10] sm:$0xff]   ;;  %v1196_v39 = vld [vmem:[%s1699_s11 + $0x20] sm:$0xff]  }
 0x19f   : > { %1050 = vmatpush3.bf16.msra.mxu1 %v1192_v34  ;;  %v1195_v38 = vld [vmem:[%s1699_s11 + $0x18] sm:$0xff]   ;;  %v1197_v40 = vld [vmem:[%s1699_s11 + $0x28] sm:$0xff]   ;;  %v1198_v41 = vld [vmem:[%s1699_s11 + $0x30] sm:$0xff]  }
 0x1a0   : > { %v501_v32 = vld [vmem:[#allocation2 + $0x8] sm:$0xff]  ;;  %1051 = vmatprep.subr.bf16.mxu1 %v1193_v35  ;;  %v1199_v42 = vld [vmem:[%s1699_s11 + $0x38] sm:$0xff]   ;;  %v1200_v13 = vld [vmem:[#allocation12] sm:$0xff] (!%p972_p13)  }
 0x1a1   : > { %v1714_v31 = vld [vmem:[#allocation2] sm:$0xff]  ;;  %v598_v59 = vunpack.c.l.bf16 %v501_v32  ;;  %v599_v61 = vunpack.c.h.bf16 %v501_v32  ;;  %v1201_v14 = vld [vmem:[#allocation12 + $0x8] sm:$0xff] (!%p972_p13)   ;;  %v1202_v15 = vld [vmem:[#allocation12 + $0x10] sm:$0xff] (!%p972_p13)  }
 0x1a2   : > { %1041 = vmatprep.subr.bf16.mxu0 %v1714_v31  ;;  %v507_v43 = vld [vmem:[#allocation3 + $0x8] sm:$0xff]  ;;  %v596_v60 = vunpack.c.l.bf16 %v1714_v31  ;;  %v597_v63 = vunpack.c.h.bf16 %v1714_v31  ;;  %v1204_v17 = vld [vmem:[#allocation12 + $0x20] sm:$0xff] (!%p972_p13)   ;;  %v1205_v18 = vld [vmem:[#allocation12 + $0x28] sm:$0xff] (!%p972_p13)  }
 0x1a3   : > { %1042 = vmatpush3.bf16.msra.mxu0 %v1714_v31  ;;  %1052 = vmatpush3.bf16.msra.mxu1 %v1193_v35  ;;  %v506_v44 = vld [vmem:[#allocation3] sm:$0xff]  ;;  %v510_v45 = vunpack.c.l.bf16 %v507_v43  ;;  %v511_v46 = vunpack.c.h.bf16 %v507_v43  ;;  %v1203_v16 = vld [vmem:[#allocation12 + $0x18] sm:$0xff] (!%p972_p13)   ;;  %v973_v21 = vld [vmem:[%s1774_s6] ss:$0 sm:$0xff] (!%p972_p13) }
 0x1a4   : > { %1043 = vmatprep.subr.bf16.mxu0 %v501_v32  ;;  %1053 = vmatprep.subr.bf16.mxu1 %v1194_v37  ;;  %v508_v48 = vunpack.c.l.bf16 %v506_v44  ;;  %v509_v49 = vunpack.c.h.bf16 %v506_v44  ;;  %v1206_v19 = vld [vmem:[#allocation12 + $0x30] sm:$0xff] (!%p972_p13)   ;;  %v1207_v20 = vld [vmem:[#allocation12 + $0x38] sm:$0xff] (!%p972_p13)  }
 0x1a7   : > { %1044 = vmatpush3.bf16.msra.mxu0 %v501_v32  ;;  %1054 = vmatpush3.bf16.msra.mxu1 %v1194_v37 }
 0x1a8   : > { %1055 = vmatprep.subr.bf16.mxu1 %v1195_v38  ;;  %1069 = vmatprep.subr.bf16.mxu0 (!%p972_p13), %v1200_v13 }
 0x1aa   : > { %1046 = vmatmul.mubr.msk.bf16.vlgmr.msra.gmra.mrb[0].mxu0 %vm522_vm0, %v1191_v36 }
 0x1ab   : > { %1056 = vmatpush3.bf16.msra.mxu1 %v1195_v38  ;;  %1070 = vmatpush3.bf16.msra.mxu0 (!%p972_p13), %v1200_v13 }
 0x1ac   : > { %1057 = vmatprep.subr.bf16.mxu1 %v1196_v39  ;;  %1071 = vmatprep.subr.bf16.mxu0 (!%p972_p13), %v1201_v14 }
 0x1af   : > { %1058 = vmatpush3.bf16.msra.mxu1 %v1196_v39  ;;  %1072 = vmatpush3.bf16.msra.mxu0 (!%p972_p13), %v1201_v14 }
 0x1b0   : > { %1059 = vmatprep.subr.bf16.mxu1 %v1197_v40  ;;  %1073 = vmatprep.subr.bf16.mxu0 (!%p972_p13), %v1202_v15 }
 0x1b3   : > { %1060 = vmatpush3.bf16.msra.mxu1 %v1197_v40  ;;  %1074 = vmatpush3.bf16.msra.mxu0 (!%p972_p13), %v1202_v15 }
 0x1b4   : > { %1061 = vmatprep.subr.bf16.mxu1 %v1198_v41  ;;  %1075 = vmatprep.subr.bf16.mxu0 (!%p972_p13), %v1203_v16 }
 0x1b7   : > { %1062 = vmatpush3.bf16.msra.mxu1 %v1198_v41  ;;  %1076 = vmatpush3.bf16.msra.mxu0 (!%p972_p13), %v1203_v16 }
 0x1b8   : > { %1063 = vmatprep.subr.bf16.mxu1 %v1199_v42  ;;  %1077 = vmatprep.subr.bf16.mxu0 (!%p972_p13), %v1204_v17 }
 0x1bb   : > { %1064 = vmatpush3.bf16.msra.mxu1 %v1199_v42  ;;  %1078 = vmatpush3.bf16.msra.mxu0 (!%p972_p13), %v1204_v17 }
 0x1bc   : > { %1079 = vmatprep.subr.bf16.mxu0 (!%p972_p13), %v1205_v18 }
 0x1bf   : > { %1080 = vmatpush3.bf16.msra.mxu0 (!%p972_p13), %v1205_v18 }
 0x1c0   : > { %1081 = vmatprep.subr.bf16.mxu0 (!%p972_p13), %v1206_v19 }
 0x1c3   : > { %1082 = vmatpush3.bf16.msra.mxu0 (!%p972_p13), %v1206_v19 }
 0x1c4   : > { %1083 = vmatprep.subr.bf16.mxu0 (!%p972_p13), %v1207_v20 }
 0x1c7   : > { %1084 = vmatpush3.bf16.msra.mxu0 (!%p972_p13), %v1207_v20 }
 0x27d   : > { %v1047_v47 = vpop.f32.mrb[0].mxu0 }
 0x27e   : > { %v563_v50 = vpop.f32.mrb[1].mxu0  ;;  %v572_v52 = vadd.f32 %v1047_v47, %v510_v45 }
 0x27f   : > { %v1048_v51 = vpop.f32.mrb[2].mxu0  ;;  %v564_v55 = vadd.f32 %v563_v50, %v508_v48 }
 0x280   : > { %v575_v53 = vadd.f32 %v1048_v51, %v511_v46  ;;  %v566_v54 = vpop.f32.mrb[3].mxu0 }
 0x281   : > { %v567_v56 = vadd.f32 %v566_v54, %v509_v49 }
 0x282   : > { %v579_v57 = vpack.c.bf16 %v575_v53, %v572_v52 }
 0x283   : > { %v578_v58 = vpack.c.bf16 %v567_v56, %v564_v55 }
 0x285   : > { %1065 = vmatprep.mubr.bf16.mxu1 %v578_v58 }
 0x286   : > { %1066 = vmatmul.mubr.bf16.vlgmr.msra.gmra.mrb[0].mxu1 %v579_v57 }
 0x359   : > { %v1067_v62 = vpop.f32.mrb[0].mxu1 }
 0x35a   : > { %v691_v0 = vadd.f32 %v1067_v62, %v598_v59  ;;  %v682_v1 = vpop.f32.mrb[1].mxu1 }
 0x35b   : > { %v683_v2 = vadd.f32 %v682_v1, %v596_v60  ;;  %v1068_v3 = vpop.f32.mrb[2].mxu1 }
 0x35c   : > { %v694_v4 = vadd.f32 %v1068_v3, %v599_v61  ;;  %v685_v5 = vpop.f32.mrb[3].mxu1  ;;  %v699_v7 = vmax.f32 %v691_v0, 0.0 }
 0x35d   : > { %v686_v6 = vadd.f32 %v685_v5, %v597_v63  ;;  %v697_v9 = vmax.f32 %v683_v2, 0.0  ;;  %708 = sbr.rel (%p972_p13) target bundleno = 1086 (0x43e), region = 76 }
 0x35e   : > { %v700_v8 = vmax.f32 %v694_v4, 0.0 }
 0x35f   : > { %v698_v10 = vmax.f32 %v686_v6, 0.0 }
 0x360   : > { %v702_v11 = vpack.c.bf16 %v700_v8, %v699_v7 }
 0x361   : > { %v701_v12 = vpack.c.bf16 %v698_v10, %v697_v9 }
 0x362   : > { %704 = vst [vmem:[#allocation2 + $0x8] sm:$0xff] %v702_v11 }
 0x363   : > { %703 = vst [vmem:[#allocation2] sm:$0xff] %v701_v12  ;;  %1085 = vmatprep.mubr.bf16.mxu0 (!%p972_p13), %v701_v12 }
 0x364   : > { %1086 = vmatmul.mubr.bf16.vlgmr.msra.gmra.mrb[0].mxu0 %v702_v11 }
 0x437   : > { %v1087_v22 = vpop.f32.mrb[0].mxu0 }
 0x438   : > { %v823_v23 = vadd.f32 %v1087_v22, %v973_v21  ;;  %v814_v24 = vpop.f32.mrb[1].mxu0 }
 0x439   : > { %v815_v25 = vadd.f32 %v973_v21, %v814_v24  ;;  %v1088_v26 = vpop.f32.mrb[2].mxu0 }
 0x43a   : > { %831 = vst [vmem:[#allocation13 + $0x10] sm:$0xff] %v823_v23  ;;  %v826_v27 = vadd.f32 %v1088_v26, %v973_v21  ;;  %v817_v28 = vpop.f32.mrb[3].mxu0 }
 0x43b   : > { %829 = vst [vmem:[#allocation13] sm:$0xff] %v815_v25  ;;  %v818_v29 = vadd.f32 %v973_v21, %v817_v28 }
 0x43c   : > { %832 = vst [vmem:[#allocation13 + $0x18] sm:$0xff] %v826_v27 }
 0x43d   : > { %830 = vst [vmem:[#allocation13 + $0x8] sm:$0xff] %v818_v29 }
 0x43e PF: > { %p1137_p0 = scmp.eq.s32.totalorder %s1497_s28, 2  ;;  %s1435_s10 = smov [#allocation13]  }
 0x43f   : > { %s839_s9 = sshll.u32 %s1435_s10, 4  ;;  %s840_s9 = int_to_ptr.vmem [resolvable:$true] %s839_s9 }
 0x440   : > { %s1350_s15 = scalar_lea.vmem %s840_s9, 512  ;;  %p1357_p2 = scmp.lt.s32.totalorder %s840_s9, %s840_s9 }
 0x441   : > { %p1351_p3 = scmp.ne.s32.totalorder %s840_s9, %s1350_s15  ;;  %p1358_p7 = scmp.lt.s32.totalorder %s1350_s15, %s1350_s15 }
 0x443   : > { %p1352_p9 = pnand %p1351_p3, %p1137_p0  ;;  %p1359_p1 = por %p1358_p7, %p1357_p2 }
 0x445   : > { %p1353_p11 = pneg %p1352_p9 }
 0x447   : > { %p1360_p4 = pnand %p1359_p1, %p1353_p11 }
 0x449   : > { %1363 = shalt.err (!%p1360_p4)
}
 0x44a   : > { %s1364_s23 = scalar_lea.hbm %s1775_s7, 512 }
 0x44b   : > { %p1365_p10 = scmp.ne.s32.totalorder %s1775_s7, %s1364_s23  ;;  %p1370_p6 = scmp.lt.u32.totalorder %s1364_s23, %s1775_s7 }
 0x44d   : > { %p1366_p8 = pnand %p1365_p10, %p1137_p0 }
 0x44f   : > { %p1367_p5 = pneg %p1366_p8 }
 0x451   : > { %p1372_p12 = pnand %p1370_p6, %p1367_p5 }
 0x453   : > { %1375 = shalt.err (!%p1372_p12)
}
 0x454   : > { %s1436_s24 = smov 128   ;;  %s1437_s8 = smov 8  }
 0x455   : > { %1108 = dma.vmem_to_hbm [thread:$0]  (%p1137_p0), %s840_s9, 512, %s1775_s7, [#allocation6], %s1436_s24, %s1436_s24, %s1437_s8  }
 0x456   : > { %1409 = dma.done.wait (%p1137_p0), [#allocation6], 512  }
 0x457   : > { %1411 = vsyncadd (%p1137_p0), [#allocation6], 4294966784 }
 0x458 PF: > { %p20_p13 = scmp.ge.s32.totalorder %s1630_s20, 5   ;;  %s1793_s24 = smov %s1418_s25 }
 0x459   : > { %s1794_s25 = smov %s1422_s26  ;;  %s1795_s26 = smov %s1641_s13 }
 0x45a   : > { %s1796_s27 = smov %s1630_s20  ;;  %22 = sbr.rel (!%p20_p13) target bundleno = 6 (0x6), region = 110 }
 0x461   :  { %855 = vsyncpa [#allocation5], 1 }
 0x462   :  { %857 = vsyncpa [#allocation5 + $0x1], 1 }
 0x463   :  { %858 = vsyncpa [#allocation8], 1 }
 0x464   :  { %859 = vsyncpa [#allocation11], 1 }
 0x465   :  { %861 = vsyncpa [#allocation11 + $0x1], 1 }
 0x466   :  { %862 = vsyncpa [#allocation6], 1 }
 0x467   :  { %864 = vsyncpa [#allocation6 + $0x1], 1 }

// kernel: tpu_custom_call.1
= control target key start
LH: loop header
LB: loop body
LE: loop exit
PB: predicated region body
PF: predicated region fallthrough
CT: control target
= control target key end

     0   :  { %12 = vsyncpa [#allocation5], 0  ;;  %s1768_s0 = inlined_call_operand.hbm [shape: bf16[32,128], index: 0, kind: input, shape index: {}]   ;;  %s1769_s1 = inlined_call_operand.hbm [shape: bf16[32,32], index: 1, kind: input, shape index: {}]   ;;  %s1770_s2 = inlined_call_operand.hbm [shape: bf16[128,128], index: 2, kind: input, shape index: {}]   ;;  %s1771_s3 = inlined_call_operand.vmem [shape: f32[1,128], index: 3, kind: input, shape index: {}]   ;;  %s1772_s4 = inlined_call_operand.hbm [shape: bf16[3,128,128], index: 4, kind: input, shape index: {}]   ;;  %s1773_s5 = inlined_call_operand.hbm [shape: bf16[128,128], index: 5, kind: input, shape index: {}]   ;;  %s1774_s6 = inlined_call_operand.vmem [shape: f32[1,128], index: 6, kind: input, shape index: {}]   ;;  %s1775_s7 = inlined_call_operand.hbm [shape: f32[32,128], index: 7, kind: output, shape index: {}]  }
   0x1   :  { %13 = vsyncpa [#allocation8], 0 }
   0x2   :  { %14 = vsyncpa [#allocation11], 0 }
   0x3   :  { %16 = vsyncpa [#allocation11 + $0x1], 0 }
   0x4   :  { %17 = vsyncpa [#allocation6], 0  ;;  %s1478_s24 = smov 0   ;;  %s1480_s25 = smov 0  }
   0x5   :  { %s1482_s26 = smov 0   ;;  %s1484_s27 = smov 0  }
   0x6 LB: > { %s1497_s28 = sadd.s32 4294967295, %s1426_s27   ;;  %p127_p0 = scmp.ne.s32.totalorder %s1418_s25, %s1414_s24  ;;  %s1426_s27 = sphi %s1484_s27, %s1796_s27   ;;  %s1422_s26 = sphi %s1482_s26, %s1795_s26   ;;  %s1418_s25 = sphi %s1480_s25, %s1794_s25   ;;  %s1414_s24 = sphi %s1478_s24, %s1793_s24  }
   0x7   : > { %p1776_p1 = scmp.eq.s32.totalorder %s1497_s28, 0  ;;  %p933_p2 = scmp.ge.s32.totalorder %s1426_s27, 1 }
   0x8   : > { %p201_p3 = scmp.lt.s32.totalorder %s1426_s27, 4  ;;  %s1428_s8 = smov [#allocation7]  }
   0x9   : > { %p1506_p5 = por %p1776_p1, %p127_p0  ;;  %s226_s9 = sshll.u32 %s1428_s8, 4  ;;  %s1516_s9 = int_to_ptr.vmem [resolvable:$true] %s226_s9 }
   0xa   : > { %p1510_p6 = pnand %p933_p2, %p201_p3  ;;  %s1429_s11 = smov [#allocation12]  }
   0xb   : > { %s1779_s29 = scalar_select %p1506_p5, 1, 0 }
   0xc   : > { %s1780_s30 = scalar_select %p1510_p6, 1, 0 }
   0xd   : > { %p1111_p7 = pneg %p1510_p6  ;;  %s255_s12 = sshll.u32 %s1429_s11, 4  ;;  %s1524_s12 = int_to_ptr.vmem [resolvable:$true] %s255_s12 }
   0xe   : > { %s1430_s13 = smov [#allocation4]   ;;  %s1208_s17 = scalar_lea.hbm %s1769_s1, 256 }
   0xf   : > { %p1520_p8 = pnand %p1111_p7, %p1776_p1  ;;  %s1526_s14 = sshll.u32 %s1430_s13, 4  ;;  %s214_s14 = int_to_ptr.vmem [resolvable:$true] %s1526_s14 }
  0x10   : > { %p1209_p9 = scmp.ne.s32.totalorder %s1769_s1, %s1208_s17  ;;  %p1215_p13 = scmp.lt.u32.totalorder %s1208_s17, %s1769_s1 }
  0x11   : > { %p1536_p10 = pneg %p1520_p8 }
  0x13   : > { %p1211_p11 = pnand %p1536_p10, %p1209_p9 }
  0x15   : > { %p1212_p12 = pneg %p1211_p11 }
  0x17   : > { %p1217_p0 = pnand %p1215_p13, %p1212_p12 }
  0x19   : > { %1220 = shalt.err (!%p1217_p0)
}
  0x1a   : > { %s1221_s23 = scalar_lea.vmem %s1516_s9, 256  ;;  %p1229_p4 = scmp.lt.s32.totalorder %s1516_s9, %s1516_s9 }
  0x1b   : > { %p1222_p2 = scmp.ne.s32.totalorder %s1516_s9, %s1221_s23  ;;  %p1230_p1 = scmp.lt.s32.totalorder %s1221_s23, %s1221_s23 }
  0x1d   : > { %p1224_p3 = pnand %p1222_p2, %p1536_p10  ;;  %p1231_p9 = por %p1230_p1, %p1229_p4 }
  0x1f   : > { %p1225_p7 = pneg %p1224_p3 }
  0x21   : > { %p1232_p11 = pnand %p1231_p9, %p1225_p7 }
  0x23   : > { %1235 = shalt.err (!%p1232_p11)
}
  0x24   : > { %s1431_s24 = smov 64   ;;  %s1432_s8 = smov 4  }
  0x25   : > { %1117 = dma.hbm_to_vmem [thread:$0]  (!%p1520_p8), %s1769_s1, 256, %s1516_s9, [#allocation8], %s1431_s24, %s1431_s24, %s1432_s8  }
  0x26   : > { %s1236_s17 = scalar_lea.hbm %s1773_s5, 1024 }
  0x27   : > { %p1237_p1 = scmp.ne.s32.totalorder %s1773_s5, %s1236_s17  ;;  %p1243_p13 = scmp.lt.u32.totalorder %s1236_s17, %s1773_s5 }
  0x29   : > { %p1239_p4 = pnand %p1237_p1, %p1536_p10 }
  0x2b   : > { %p1240_p12 = pneg %p1239_p4 }
  0x2d   : > { %p1245_p0 = pnand %p1243_p13, %p1240_p12 }
  0x2f   : > { %1248 = shalt.err (!%p1245_p0)
}
  0x30   : > { %s1249_s9 = scalar_lea.vmem %s1524_s12, 1024  ;;  %p1257_p9 = scmp.lt.s32.totalorder %s1524_s12, %s1524_s12 }
  0x31   : > { %p1250_p2 = scmp.ne.s32.totalorder %s1524_s12, %s1249_s9  ;;  %p1258_p11 = scmp.lt.s32.totalorder %s1249_s9, %s1249_s9 }
  0x33   : > { %p1252_p3 = pnand %p1250_p2, %p1536_p10  ;;  %p1259_p1 = por %p1258_p11, %p1257_p9 }
  0x35   : > { %p1253_p7 = pneg %p1252_p3 }
  0x37   : > { %p1260_p4 = pnand %p1259_p1, %p1253_p7 }
  0x39   : > { %1263 = shalt.err (!%p1260_p4)
}
  0x3a   : > { %1123 = dma.hbm_to_vmem [thread:$0]  (!%p1520_p8), %s1773_s5, 1024, %s1524_s12, [#allocation11], %s1431_s24, %s1431_s24, %s1432_s8  }
  0x3b   : > { %s1264_s16 = scalar_lea.hbm %s1768_s0, 256 }
  0x3c   : > { %p1265_p12 = scmp.ne.s32.totalorder %s1768_s0, %s1264_s16  ;;  %p1271_p2 = scmp.lt.u32.totalorder %s1264_s16, %s1768_s0 }
  0x3e   : > { %p1267_p13 = pnand %p1265_p12, %p1536_p10 }
  0x40   : > { %p1268_p0 = pneg %p1267_p13 }
  0x42   : > { %p1273_p3 = pnand %p1271_p2, %p1268_p0 }
  0x44   : > { %1276 = shalt.err (!%p1273_p3)
}
  0x45   : > { %s1277_s22 = scalar_lea.vmem %s214_s14, 256  ;;  %p1285_p1 = scmp.lt.s32.totalorder %s214_s14, %s214_s14 }
  0x46   : > { %p1278_p7 = scmp.ne.s32.totalorder %s214_s14, %s1277_s22  ;;  %p1286_p4 = scmp.lt.s32.totalorder %s1277_s22, %s1277_s22 }
  0x48   : > { %p1280_p9 = pnand %p1278_p7, %p1536_p10  ;;  %p1287_p5 = por %p1286_p4, %p1285_p1 }
  0x4a   : > { %p1281_p11 = pneg %p1280_p9 }
  0x4c   : > { %p1288_p6 = pnand %p1287_p5, %p1281_p11 }
  0x4e   : > { %1291 = shalt.err (!%p1288_p6)
}
  0x4f   : > { %1114 = dma.hbm_to_vmem [thread:$0]  (!%p1520_p8), %s1768_s0, 256, %s214_s14, [#allocation5], %s1431_s24, %s1431_s24, %s1432_s8  }
  0x50   : > { %s1433_s23 = smov [#allocation9]   ;;  %s1292_s16 = scalar_lea.hbm %s1770_s2, 1024 }
  0x51   : > { %s239_s11 = sshll.u32 %s1433_s23, 4  ;;  %p1293_p5 = scmp.ne.s32.totalorder %s1770_s2, %s1292_s16  ;;  %s240_s11 = int_to_ptr.vmem [resolvable:$true] %s239_s11 }
  0x52   : > { %p1299_p13 = scmp.lt.u32.totalorder %s1292_s16, %s1770_s2 }
  0x53   : > { %p1295_p6 = pnand %p1293_p5, %p1536_p10 }
  0x55   : > { %p1296_p12 = pneg %p1295_p6 }
  0x57   : > { %p1301_p0 = pnand %p1299_p13, %p1296_p12 }
  0x59   : > { %1304 = shalt.err (!%p1301_p0)
}
  0x5a   : > { %s1305_s14 = scalar_lea.vmem %s240_s11, 1024  ;;  %p1313_p9 = scmp.lt.s32.totalorder %s240_s11, %s240_s11 }
  0x5b   : > { %p1306_p2 = scmp.ne.s32.totalorder %s240_s11, %s1305_s14  ;;  %p1314_p11 = scmp.lt.s32.totalorder %s1305_s14, %s1305_s14 }
  0x5d   : > { %p1308_p3 = pnand %p1306_p2, %p1536_p10  ;;  %p1315_p1 = por %p1314_p11, %p1313_p9 }
  0x5f   : > { %p1309_p7 = pneg %p1308_p3 }
  0x61   : > { %p1316_p4 = pnand %p1315_p1, %p1309_p7 }
  0x63   : > { %1319 = shalt.err (!%p1316_p4)
}
  0x64   : > { %1120 = dma.hbm_to_vmem [thread:$0]  (!%p1520_p8), %s1770_s2, 1024, %s240_s11, [#allocation8], %s1431_s24, %s1431_s24, %s1432_s8  }
  0x65   : > { %s1630_s20 = sadd.s32 1, %s1426_s27   ;;  %s114_s10 = sadd.s32 1, %s1422_s26 }
  0x66   : > { %s111_s9 = ssub.s32 %s1426_s27, %s1630_s20  ;;  %p121_p10 = scmp.ne.s32.totalorder %s1422_s26, %s1418_s25 }
  0x67   : > { %p112_p5 = scmp.eq.s32.totalorder %s111_s9, 0  ;;  %p122_p6 = scmp.eq.s32.totalorder %s1426_s27, 0 }
  0x68   : > { %p1132_p12 = scmp.lt.s32.totalorder %s1426_s27, 3  ;;  %s272_s23 = sand.u32 1, %s1426_s27  }
  0x69   : > { %s1641_s13 = scalar_select %p112_p5, %s1422_s26, %s114_s10  }
  0x6a   : > { %p123_p13 = por %p122_p6, %p121_p10  ;;  %s274_s15 = sand.u32 1, %s1422_s26  }
  0x6b   : > { %s986_s16 = sshll.u32 %s1426_s27, 10  ;;  %s939_s17 = sshll.u32 %s274_s15, 6 }
  0x6c   : > { %s1648_s11 = scalar_lea.hbm %s1772_s4, %s986_s16  ;;  %p1650_p8 = pnand %p1132_p12, %p123_p13 }
  0x6d   : > { %s276_s14 = scalar_lea.vmem [#allocation10], %s939_s17  ;;  %s1656_s27 = scalar_lea.sflag [#allocation11], %s272_s23 }
  0x6e   : > { %s283_s22 = sshll.u32 %s276_s14, 4  ;;  %s1320_s12 = scalar_lea.hbm %s1648_s11, 1024  ;;  %s1654_s22 = int_to_ptr.vmem [resolvable:$true] %s283_s22 }
  0x6f   : > { %p1321_p0 = scmp.ne.s32.totalorder %s1648_s11, %s1320_s12  ;;  %p1322_p2 = pneg %p1650_p8 }
  0x70   : > { %s1325_s15 = scalar_lea.hbm %s1772_s4, 3072  ;;  %p1326_p9 = scmp.lt.u32.totalorder %s1648_s11, %s1772_s4 }
  0x71   : > { %p1323_p3 = pnand %p1322_p2, %p1321_p0  ;;  %p1327_p11 = scmp.lt.u32.totalorder %s1325_s15, %s1320_s12 }
  0x72   : > { %p1329_p4 = scmp.lt.u32.totalorder %s1320_s12, %s1648_s11 }
  0x73   : > { %p1324_p7 = pneg %p1323_p3  ;;  %p1328_p1 = por %p1327_p11, %p1326_p9 }
  0x75   : > { %p1330_p10 = por %p1329_p4, %p1328_p1 }
  0x77   : > { %p1331_p5 = pnand %p1330_p10, %p1324_p7 }
  0x79   : > { %1334 = shalt.err (!%p1331_p5)
}
  0x7a   : > { %s1335_s23 = scalar_lea.vmem %s1654_s22, 1024  ;;  %s1434_s17 = smov [#allocation10]  }
  0x7b   : > { %p1336_p6 = scmp.ne.s32.totalorder %s1654_s22, %s1335_s23  ;;  %s1340_s19 = sshll.u32 %s1434_s17, 4  ;;  %s1341_s19 = int_to_ptr.vmem [resolvable:$false] %s1340_s19 }
  0x7c   : > { %s1342_s14 = scalar_lea.vmem %s1341_s19, 2048  ;;  %p1343_p0 = scmp.lt.s32.totalorder %s1654_s22, %s1341_s19 }
  0x7d   : > { %p1338_p12 = pnand %p1336_p6, %p1322_p2  ;;  %p1344_p3 = scmp.lt.s32.totalorder %s1342_s14, %s1335_s23 }
  0x7f   : > { %p1339_p13 = pneg %p1338_p12  ;;  %p1345_p9 = por %p1344_p3, %p1343_p0 }
  0x81   : > { %p1346_p11 = pnand %p1345_p9, %p1339_p13 }
  0x83   : > { %1349 = shalt.err (!%p1346_p11)
}
  0x84   : > { %1127 = dma.hbm_to_vmem [thread:$0]  (!%p1650_p8), %s1648_s11, 1024, %s1654_s22, %s1656_s27, %s1431_s24, %s1431_s24, %s1432_s8  }
  0x85   : > { %p1784_p2 = scmp.ne.s32.totalorder %s1780_s30, 0 }
  0x86   : > { %p1785_p7 = scmp.eq.s32.totalorder (!%p1784_p2), %s1497_s28, 0 }
  0x87   : > { %295 = sbr.rel (%p1784_p2) target bundleno = 1112 (0x458), region = 48 }
  0x8e   : > { %1393 = dma.done.wait (%p1785_p7), [#allocation5], 256   ;;  %p1786_p1 = pmov %p1785_p7 }
  0x90   : > { %1395 = vsyncadd (%p1786_p1), [#allocation5], 4294967040  ;;  %p1787_p4 = pmov %p1786_p1 }
  0x91   : > { %p1788_p10 = pmov %p1786_p1 }
  0x92   : > { %1397 = dma.done.wait (%p1787_p4), [#allocation8], 1280  }
  0x93   : > { %1399 = vsyncadd (%p1788_p10), [#allocation8], 4294966016  ;;  %s309_s21 = sand.u32 1, %s1497_s28   ;;  %s311_s24 = sand.u32 1, %s1418_s25  }
  0x94   : > { %s946_s8 = sshll.u32 %s311_s24, 6  ;;  %s310_s30 = scalar_lea.sflag [#allocation11], %s309_s21 }
  0x95   : > { %s1699_s11 = scalar_lea.vmem [#allocation10], %s946_s8  ;;  %p1789_p8 = scmp.ne.s32.totalorder %s1779_s29, 0 }
  0x97   : > { %1401 = dma.done.wait (%p1789_p8), %s310_s30, 1024  }
  0x98   : > { %1403 = vsyncadd (%p1789_p8), %s310_s30, 4294966272  ;;  %p1790_p5 = pmov %p1786_p1 }
  0x99   : > { %p1791_p6 = pmov %p1786_p1 }
  0x9a   : > { %1405 = dma.done.wait (%p1790_p5), [#allocation11], 1024  }
  0x9b   : > { %1407 = vsyncadd (%p1791_p6), [#allocation11], 4294966272  ;;  %p1792_p12 = scmp.ne.s32.totalorder %s1497_s28, 0 }
  0x9c   : > { %v1180_v0 = vld [vmem:[#allocation9] sm:$0xff] (!%p1792_p12)   ;;  %v1181_v1 = vld [vmem:[#allocation9 + $0x8] sm:$0xff] (!%p1792_p12)   ;;  %v1182_v2 = vld [vmem:[#allocation9 + $0x10] sm:$0xff] (!%p1792_p12)  }
  0x9d   : > { %347 = sbr.rel (%p1792_p12) target bundleno = 413 (0x19d), region = 72  ;;  %1021 = vmatprep.subr.bf16.mxu0 (!%p1792_p12), %v1180_v0  ;;  %v1183_v3 = vld [vmem:[#allocation9 + $0x18] sm:$0xff] (!%p1792_p12)   ;;  %v1188_v4 = vld [vmem:[#allocation4] sm:$0xff] (!%p1792_p12)   ;;  %v1185_v6 = vld [vmem:[#allocation9 + $0x28] sm:$0xff] (!%p1792_p12)  }
  0x9e   : > { %1022 = vmatpush3.bf16.msra.mxu0 (!%p1792_p12), %v1180_v0  ;;  %1037 = vmatprep.mubr.bf16.mxu0 (!%p1792_p12), %v1188_v4  ;;  %v1184_v5 = vld [vmem:[#allocation9 + $0x20] sm:$0xff] (!%p1792_p12)   ;;  %v1186_v7 = vld [vmem:[#allocation9 + $0x30] sm:$0xff] (!%p1792_p12)   ;;  %v1187_v8 = vld [vmem:[#allocation9 + $0x38] sm:$0xff] (!%p1792_p12)  }
  0x9f   : > { %1023 = vmatprep.subr.bf16.mxu0 (!%p1792_p12), %v1181_v1  ;;  %v1189_v9 = vld [vmem:[#allocation4 + $0x8] sm:$0xff] (!%p1792_p12)   ;;  %v949_v10 = vld [vmem:[%s1771_s3] ss:$0 sm:$0xff] (!%p1792_p12) }
  0xa2   : > { %1024 = vmatpush3.bf16.msra.mxu0 (!%p1792_p12), %v1181_v1 }
  0xa3   : > { %1025 = vmatprep.subr.bf16.mxu0 (!%p1792_p12), %v1182_v2 }
  0xa6   : > { %1026 = vmatpush3.bf16.msra.mxu0 %v1182_v2 }
  0xa7   : > { %1027 = vmatprep.subr.bf16.mxu0 %v1183_v3 }
  0xaa   : > { %1028 = vmatpush3.bf16.msra.mxu0 %v1183_v3 }
  0xab   : > { %1029 = vmatprep.subr.bf16.mxu0 %v1184_v5 }
  0xae   : > { %1030 = vmatpush3.bf16.msra.mxu0 %v1184_v5 }
  0xaf   : > { %1031 = vmatprep.subr.bf16.mxu0 %v1185_v6 }
  0xb2   : > { %1032 = vmatpush3.bf16.msra.mxu0 %v1185_v6 }
  0xb3   : > { %1033 = vmatprep.subr.bf16.mxu0 %v1186_v7 }
  0xb6   : > { %1034 = vmatpush3.bf16.msra.mxu0 %v1186_v7 }
  0xb7   : > { %1035 = vmatprep.subr.bf16.mxu0 %v1187_v8 }
  0xba   : > { %1036 = vmatpush3.bf16.msra.mxu0 %v1187_v8 }
  0xbd   : > { %1038 = vmatmul.mubr.bf16.vlgmr.msra.gmra.mrb[0].mxu0 %v1189_v9 }
 0x190   : > { %v1039_v11 = vpop.f32.mrb[0].mxu0 }
 0x191   : > { %v478_v12 = vadd.f32 %v1039_v11, %v949_v10  ;;  %v469_v13 = vpop.f32.mrb[1].mxu0 }
 0x192   : > { %v470_v14 = vadd.f32 %v949_v10, %v469_v13  ;;  %v1040_v15 = vpop.f32.mrb[2].mxu0 }
 0x193   : > { %v486_v16 = vmax.f32 %v478_v12, 0.0  ;;  %v481_v17 = vadd.f32 %v1040_v15, %v949_v10  ;;  %v472_v18 = vpop.f32.mrb[3].mxu0 }
 0x194   : > { %v484_v19 = vmax.f32 %v470_v14, 0.0  ;;  %v473_v20 = vadd.f32 %v949_v10, %v472_v18 }
 0x195   : > { %v487_v21 = vmax.f32 %v481_v17, 0.0  ;;  %v494_v23 = vmul.f32 0.1, %v486_v16 }
 0x196   : > { %v485_v22 = vmax.f32 %v473_v20, 0.0  ;;  %v492_v26 = vmul.f32 0.1, %v484_v19 }
 0x197   : > { %v489_v24 = vpack.c.bf16 %v487_v21, %v486_v16  ;;  %v495_v25 = vmul.f32 0.1, %v487_v21 }
 0x198   : > { %v488_v27 = vpack.c.bf16 %v485_v22, %v484_v19  ;;  %v493_v28 = vmul.f32 0.1, %v485_v22 }
 0x199   : > { %491 = vst [vmem:[#allocation2 + $0x8] sm:$0xff] %v489_v24  ;;  %v497_v29 = vpack.c.bf16 %v495_v25, %v494_v23 }
 0x19a   : > { %490 = vst [vmem:[#allocation2] sm:$0xff] %v488_v27  ;;  %v496_v30 = vpack.c.bf16 %v493_v28, %v492_v26 }
 0x19b   : > { %499 = vst [vmem:[#allocation3 + $0x8] sm:$0xff] %v497_v29 }
 0x19c   : > { %498 = vst [vmem:[#allocation3] sm:$0xff] %v496_v30 }
 0x19d PF: > { %vm522_vm0 = vcmask 261120   ;;  %v1190_v33 = vld [vmem:[#allocation7] sm:$0xff]   ;;  %v1192_v34 = vld [vmem:[%s1699_s11] sm:$0xff]   ;;  %v1193_v35 = vld [vmem:[%s1699_s11 + $0x8] sm:$0xff]   ;;  %p972_p13 = scmp.ne.s32.totalorder %s1497_s28, 2 }
 0x19e   : > { %1045 = vmatprep.mubr.msk.bf16.mxu0 %vm522_vm0, %v1190_v33  ;;  %v1191_v36 = vld [vmem:[#allocation7 + $0x8] sm:$0xff]   ;;  %1049 = vmatprep.subr.bf16.mxu1 %v1192_v34  ;;  %v1194_v37 = vld [vmem:[%s1699_s11 + $0x10] sm:$0xff]   ;;  %v1196_v39 = vld [vmem:[%s1699_s11 + $0x20] sm:$0xff]  }
 0x19f   : > { %1050 = vmatpush3.bf16.msra.mxu1 %v1192_v34  ;;  %v1195_v38 = vld [vmem:[%s1699_s11 + $0x18] sm:$0xff]   ;;  %v1197_v40 = vld [vmem:[%s1699_s11 + $0x28] sm:$0xff]   ;;  %v1198_v41 = vld [vmem:[%s1699_s11 + $0x30] sm:$0xff]  }
 0x1a0   : > { %v501_v32 = vld [vmem:[#allocation2 + $0x8] sm:$0xff]  ;;  %1051 = vmatprep.subr.bf16.mxu1 %v1193_v35  ;;  %v1199_v42 = vld [vmem:[%s1699_s11 + $0x38] sm:$0xff]   ;;  %v1200_v13 = vld [vmem:[#allocation12] sm:$0xff] (!%p972_p13)  }
 0x1a1   : > { %v1714_v31 = vld [vmem:[#allocation2] sm:$0xff]  ;;  %v598_v59 = vunpack.c.l.bf16 %v501_v32  ;;  %v599_v61 = vunpack.c.h.bf16 %v501_v32  ;;  %v1201_v14 = vld [vmem:[#allocation12 + $0x8] sm:$0xff] (!%p972_p13)   ;;  %v1202_v15 = vld [vmem:[#allocation12 + $0x10] sm:$0xff] (!%p972_p13)  }
 0x1a2   : > { %1041 = vmatprep.subr.bf16.mxu0 %v1714_v31  ;;  %v507_v43 = vld [vmem:[#allocation3 + $0x8] sm:$0xff]  ;;  %v596_v60 = vunpack.c.l.bf16 %v1714_v31  ;;  %v597_v63 = vunpack.c.h.bf16 %v1714_v31  ;;  %v1204_v17 = vld [vmem:[#allocation12 + $0x20] sm:$0xff] (!%p972_p13)   ;;  %v1205_v18 = vld [vmem:[#allocation12 + $0x28] sm:$0xff] (!%p972_p13)  }
 0x1a3   : > { %1042 = vmatpush3.bf16.msra.mxu0 %v1714_v31  ;;  %1052 = vmatpush3.bf16.msra.mxu1 %v1193_v35  ;;  %v506_v44 = vld [vmem:[#allocation3] sm:$0xff]  ;;  %v510_v45 = vunpack.c.l.bf16 %v507_v43  ;;  %v511_v46 = vunpack.c.h.bf16 %v507_v43  ;;  %v1203_v16 = vld [vmem:[#allocation12 + $0x18] sm:$0xff] (!%p972_p13)   ;;  %v973_v21 = vld [vmem:[%s1774_s6] ss:$0 sm:$0xff] (!%p972_p13) }
 0x1a4   : > { %1043 = vmatprep.subr.bf16.mxu0 %v501_v32  ;;  %1053 = vmatprep.subr.bf16.mxu1 %v1194_v37  ;;  %v508_v48 = vunpack.c.l.bf16 %v506_v44  ;;  %v509_v49 = vunpack.c.h.bf16 %v506_v44  ;;  %v1206_v19 = vld [vmem:[#allocation12 + $0x30] sm:$0xff] (!%p972_p13)   ;;  %v1207_v20 = vld [vmem:[#allocation12 + $0x38] sm:$0xff] (!%p972_p13)  }
 0x1a7   : > { %1044 = vmatpush3.bf16.msra.mxu0 %v501_v32  ;;  %1054 = vmatpush3.bf16.msra.mxu1 %v1194_v37 }
 0x1a8   : > { %1055 = vmatprep.subr.bf16.mxu1 %v1195_v38  ;;  %1069 = vmatprep.subr.bf16.mxu0 (!%p972_p13), %v1200_v13 }
 0x1aa   : > { %1046 = vmatmul.mubr.msk.bf16.vlgmr.msra.gmra.mrb[0].mxu0 %vm522_vm0, %v1191_v36 }
 0x1ab   : > { %1056 = vmatpush3.bf16.msra.mxu1 %v1195_v38  ;;  %1070 = vmatpush3.bf16.msra.mxu0 (!%p972_p13), %v1200_v13 }
 0x1ac   : > { %1057 = vmatprep.subr.bf16.mxu1 %v1196_v39  ;;  %1071 = vmatprep.subr.bf16.mxu0 (!%p972_p13), %v1201_v14 }
 0x1af   : > { %1058 = vmatpush3.bf16.msra.mxu1 %v1196_v39  ;;  %1072 = vmatpush3.bf16.msra.mxu0 (!%p972_p13), %v1201_v14 }
 0x1b0   : > { %1059 = vmatprep.subr.bf16.mxu1 %v1197_v40  ;;  %1073 = vmatprep.subr.bf16.mxu0 (!%p972_p13), %v1202_v15 }
 0x1b3   : > { %1060 = vmatpush3.bf16.msra.mxu1 %v1197_v40  ;;  %1074 = vmatpush3.bf16.msra.mxu0 (!%p972_p13), %v1202_v15 }
 0x1b4   : > { %1061 = vmatprep.subr.bf16.mxu1 %v1198_v41  ;;  %1075 = vmatprep.subr.bf16.mxu0 (!%p972_p13), %v1203_v16 }
 0x1b7   : > { %1062 = vmatpush3.bf16.msra.mxu1 %v1198_v41  ;;  %1076 = vmatpush3.bf16.msra.mxu0 (!%p972_p13), %v1203_v16 }
 0x1b8   : > { %1063 = vmatprep.subr.bf16.mxu1 %v1199_v42  ;;  %1077 = vmatprep.subr.bf16.mxu0 (!%p972_p13), %v1204_v17 }
 0x1bb   : > { %1064 = vmatpush3.bf16.msra.mxu1 %v1199_v42  ;;  %1078 = vmatpush3.bf16.msra.mxu0 (!%p972_p13), %v1204_v17 }
 0x1bc   : > { %1079 = vmatprep.subr.bf16.mxu0 (!%p972_p13), %v1205_v18 }
 0x1bf   : > { %1080 = vmatpush3.bf16.msra.mxu0 (!%p972_p13), %v1205_v18 }
 0x1c0   : > { %1081 = vmatprep.subr.bf16.mxu0 (!%p972_p13), %v1206_v19 }
 0x1c3   : > { %1082 = vmatpush3.bf16.msra.mxu0 (!%p972_p13), %v1206_v19 }
 0x1c4   : > { %1083 = vmatprep.subr.bf16.mxu0 (!%p972_p13), %v1207_v20 }
 0x1c7   : > { %1084 = vmatpush3.bf16.msra.mxu0 (!%p972_p13), %v1207_v20 }
 0x27d   : > { %v1047_v47 = vpop.f32.mrb[0].mxu0 }
 0x27e   : > { %v563_v50 = vpop.f32.mrb[1].mxu0  ;;  %v572_v52 = vadd.f32 %v1047_v47, %v510_v45 }
 0x27f   : > { %v1048_v51 = vpop.f32.mrb[2].mxu0  ;;  %v564_v55 = vadd.f32 %v563_v50, %v508_v48 }
 0x280   : > { %v575_v53 = vadd.f32 %v1048_v51, %v511_v46  ;;  %v566_v54 = vpop.f32.mrb[3].mxu0 }
 0x281   : > { %v567_v56 = vadd.f32 %v566_v54, %v509_v49 }
 0x282   : > { %v579_v57 = vpack.c.bf16 %v575_v53, %v572_v52 }
 0x283   : > { %v578_v58 = vpack.c.bf16 %v567_v56, %v564_v55 }
 0x285   : > { %1065 = vmatprep.mubr.bf16.mxu1 %v578_v58 }
 0x286   : > { %1066 = vmatmul.mubr.bf16.vlgmr.msra.gmra.mrb[0].mxu1 %v579_v57 }
 0x359   : > { %v1067_v62 = vpop.f32.mrb[0].mxu1 }
 0x35a   : > { %v691_v0 = vadd.f32 %v1067_v62, %v598_v59  ;;  %v682_v1 = vpop.f32.mrb[1].mxu1 }
 0x35b   : > { %v683_v2 = vadd.f32 %v682_v1, %v596_v60  ;;  %v1068_v3 = vpop.f32.mrb[2].mxu1 }
 0x35c   : > { %v694_v4 = vadd.f32 %v1068_v3, %v599_v61  ;;  %v685_v5 = vpop.f32.mrb[3].mxu1  ;;  %v699_v7 = vmax.f32 %v691_v0, 0.0 }
 0x35d   : > { %v686_v6 = vadd.f32 %v685_v5, %v597_v63  ;;  %v697_v9 = vmax.f32 %v683_v2, 0.0  ;;  %708 = sbr.rel (%p972_p13) target bundleno = 1086 (0x43e), region = 76 }
 0x35e   : > { %v700_v8 = vmax.f32 %v694_v4, 0.0 }
 0x35f   : > { %v698_v10 = vmax.f32 %v686_v6, 0.0 }
 0x360   : > { %v702_v11 = vpack.c.bf16 %v700_v8, %v699_v7 }
 0x361   : > { %v701_v12 = vpack.c.bf16 %v698_v10, %v697_v9 }
 0x362   : > { %704 = vst [vmem:[#allocation2 + $0x8] sm:$0xff] %v702_v11 }
 0x363   : > { %703 = vst [vmem:[#allocation2] sm:$0xff] %v701_v12  ;;  %1085 = vmatprep.mubr.bf16.mxu0 (!%p972_p13), %v701_v12 }
 0x364   : > { %1086 = vmatmul.mubr.bf16.vlgmr.msra.gmra.mrb[0].mxu0 %v702_v11 }
 0x437   : > { %v1087_v22 = vpop.f32.mrb[0].mxu0 }
 0x438   : > { %v823_v23 = vadd.f32 %v1087_v22, %v973_v21  ;;  %v814_v24 = vpop.f32.mrb[1].mxu0 }
 0x439   : > { %v815_v25 = vadd.f32 %v973_v21, %v814_v24  ;;  %v1088_v26 = vpop.f32.mrb[2].mxu0 }
 0x43a   : > { %831 = vst [vmem:[#allocation13 + $0x10] sm:$0xff] %v823_v23  ;;  %v826_v27 = vadd.f32 %v1088_v26, %v973_v21  ;;  %v817_v28 = vpop.f32.mrb[3].mxu0 }
 0x43b   : > { %829 = vst [vmem:[#allocation13] sm:$0xff] %v815_v25  ;;  %v818_v29 = vadd.f32 %v973_v21, %v817_v28 }
 0x43c   : > { %832 = vst [vmem:[#allocation13 + $0x18] sm:$0xff] %v826_v27 }
 0x43d   : > { %830 = vst [vmem:[#allocation13 + $0x8] sm:$0xff] %v818_v29 }
 0x43e PF: > { %p1137_p0 = scmp.eq.s32.totalorder %s1497_s28, 2  ;;  %s1435_s10 = smov [#allocation13]  }
 0x43f   : > { %s839_s9 = sshll.u32 %s1435_s10, 4  ;;  %s840_s9 = int_to_ptr.vmem [resolvable:$true] %s839_s9 }
 0x440   : > { %s1350_s15 = scalar_lea.vmem %s840_s9, 512  ;;  %p1357_p2 = scmp.lt.s32.totalorder %s840_s9, %s840_s9 }
 0x441   : > { %p1351_p3 = scmp.ne.s32.totalorder %s840_s9, %s1350_s15  ;;  %p1358_p7 = scmp.lt.s32.totalorder %s1350_s15, %s1350_s15 }
 0x443   : > { %p1352_p9 = pnand %p1351_p3, %p1137_p0  ;;  %p1359_p1 = por %p1358_p7, %p1357_p2 }
 0x445   : > { %p1353_p11 = pneg %p1352_p9 }
 0x447   : > { %p1360_p4 = pnand %p1359_p1, %p1353_p11 }
 0x449   : > { %1363 = shalt.err (!%p1360_p4)
}
 0x44a   : > { %s1364_s23 = scalar_lea.hbm %s1775_s7, 512 }
 0x44b   : > { %p1365_p10 = scmp.ne.s32.totalorder %s1775_s7, %s1364_s23  ;;  %p1370_p6 = scmp.lt.u32.totalorder %s1364_s23, %s1775_s7 }
 0x44d   : > { %p1366_p8 = pnand %p1365_p10, %p1137_p0 }
 0x44f   : > { %p1367_p5 = pneg %p1366_p8 }
 0x451   : > { %p1372_p12 = pnand %p1370_p6, %p1367_p5 }
 0x453   : > { %1375 = shalt.err (!%p1372_p12)
}
 0x454   : > { %s1436_s24 = smov 128   ;;  %s1437_s8 = smov 8  }
 0x455   : > { %1108 = dma.vmem_to_hbm [thread:$0]  (%p1137_p0), %s840_s9, 512, %s1775_s7, [#allocation6], %s1436_s24, %s1436_s24, %s1437_s8  }
 0x456   : > { %1409 = dma.done.wait (%p1137_p0), [#allocation6], 512  }
 0x457   : > { %1411 = vsyncadd (%p1137_p0), [#allocation6], 4294966784 }
 0x458 PF: > { %p20_p13 = scmp.ge.s32.totalorder %s1630_s20, 5   ;;  %s1793_s24 = smov %s1418_s25 }
 0x459   : > { %s1794_s25 = smov %s1422_s26  ;;  %s1795_s26 = smov %s1641_s13 }
 0x45a   : > { %s1796_s27 = smov %s1630_s20  ;;  %22 = sbr.rel (!%p20_p13) target bundleno = 6 (0x6), region = 110 }
 0x461   :  { %855 = vsyncpa [#allocation5], 1 }
 0x462   :  { %857 = vsyncpa [#allocation5 + $0x1], 1 }
 0x463   :  { %858 = vsyncpa [#allocation8], 1 }
 0x464   :  { %859 = vsyncpa [#allocation11], 1 }
 0x465   :  { %861 = vsyncpa [#allocation11 + $0x1], 1 }
 0x466   :  { %862 = vsyncpa [#allocation6], 1 }
 0x467   :  { %864 = vsyncpa [#allocation6 + $0x1], 1 }

</bundles_post_ra>
